<compile_context>
chip_gen: v7x
topology: tpu7x:2x2x1
jax: 0.10.0
libtpu: 0.0.40
codegen_flags: <defaults>
</compile_context>

<pallas_src>
import functools

import jax
import jax.numpy as jnp
from jax.experimental import pallas as pl
from jax.experimental.pallas import tpu as pltpu


# ----------------------------------------------------------------------------
# Fused residual-block kernel
# ----------------------------------------------------------------------------
def _fill_taps(xs_ref, x):
    """Build the im2col tile for a k=3, stride=1, pad=1 conv in VMEM scratch.

    xs_ref: (L, 3*C) scratch.
      columns [0 : C ] -> tap k=0  (x shifted down by 1; row 0 is the zero pad)
      columns [C : 2C] -> tap k=1  (x)
      columns [2C: 3C] -> tap k=2  (x shifted up by 1; row L-1 is the zero pad)
    """
    L, C = x.shape
    xs_ref[...] = jnp.zeros_like(xs_ref)          # provides the pad rows
    xs_ref[1:L, 0:C] = x[0:L - 1]                 # k = 0
    xs_ref[:, C:2 * C] = x                        # k = 1
    xs_ref[0:L - 1, 2 * C:3 * C] = x[1:L]         # k = 2


def _make_resblock_kernel(has_res: bool):
    """Two static variants: with a 1x1-conv residual path or identity residual."""

    def kernel(*args):
        if has_res:
            (x_ref, w1_ref, s1_ref, b1_ref, w2_ref, s2_ref, b2_ref,
             rw_ref, rb_ref, o_ref, xs_ref, hs_ref) = args
        else:
            (x_ref, w1_ref, s1_ref, b1_ref, w2_ref, s2_ref, b2_ref,
             o_ref, xs_ref, hs_ref) = args

        x = x_ref[...]                                        # (L, Cin)

        # Residual path: 1x1 conv (single matmul) iff Cin != Cout, else identity.
        if has_res:
            r = (jnp.dot(x, rw_ref[...], preferred_element_type=jnp.float32)
                 + rb_ref[...])
        else:
            r = x

        # conv1 (k=3, pad=1) as a single K=3*Cin MXU matmul, folded BN, ReLU.
        _fill_taps(xs_ref, x)
        h = jnp.dot(xs_ref[...], w1_ref[...], preferred_element_type=jnp.float32)
        h = jnp.maximum(h * s1_ref[...] + b1_ref[...], 0.0)

        # conv2 (k=3, pad=1) as a single K=3*Cout MXU matmul, folded BN,
        # residual add, ReLU.
        _fill_taps(hs_ref, h)
        y = jnp.dot(hs_ref[...], w2_ref[...], preferred_element_type=jnp.float32)
        y = y * s2_ref[...] + b2_ref[...] + r
        o_ref[...] = jnp.maximum(y, 0.0).astype(o_ref.dtype)

    return kernel


def res_block_forward(x_ncl, params):
    """ResBlock_model2 forward.  x_ncl: (N, Cin, L) float32 (PyTorch NCL layout)."""
    x = jnp.transpose(x_ncl, (0, 2, 1))                       # -> (N, L, Cin) glue
    N, L, Cin = x.shape
    w1 = params["w1"]                                         # (3, Cin, Cout)
    Cout = w1.shape[2]
    has_res = params["res_w"] is not None
    if not has_res:
        assert Cin == Cout, "identity residual requires Cin == Cout"

    inputs = [
        x,
        w1.reshape(3 * Cin, Cout),                            # im2col weight layout
        params["s1"].reshape(1, Cout), params["b1"].reshape(1, Cout),
        params["w2"].reshape(3 * Cout, Cout),
        params["s2"].reshape(1, Cout), params["b2"].reshape(1, Cout),
    ]
    in_specs = [
        pl.BlockSpec((None, L, Cin), lambda n: (n, 0, 0)),
        pl.BlockSpec((3 * Cin, Cout), lambda n: (0, 0)),
        pl.BlockSpec((1, Cout), lambda n: (0, 0)),
        pl.BlockSpec((1, Cout), lambda n: (0, 0)),
        pl.BlockSpec((3 * Cout, Cout), lambda n: (0, 0)),
        pl.BlockSpec((1, Cout), lambda n: (0, 0)),
        pl.BlockSpec((1, Cout), lambda n: (0, 0)),
    ]
    if has_res:
        inputs += [params["res_w"], params["res_b"].reshape(1, Cout)]
        in_specs += [
            pl.BlockSpec((Cin, Cout), lambda n: (0, 0)),
            pl.BlockSpec((1, Cout), lambda n: (0, 0)),
        ]

    out = pl.pallas_call(
        _make_resblock_kernel(has_res),
        out_shape=jax.ShapeDtypeStruct((N, L, Cout), jnp.float32),
        grid=(N,),                                            # batch axis only
        in_specs=in_specs,
        out_specs=pl.BlockSpec((None, L, Cout), lambda n: (n, 0, 0)),
        scratch_shapes=[
            pltpu.VMEM((L, 3 * Cin), jnp.float32),            # conv1 im2col tile
            pltpu.VMEM((L, 3 * Cout), jnp.float32),           # conv2 im2col tile
        ],
        # "parallel" so v7x's 2 TensorCores split the batch; on v5e/v6e this is
        # just a short serial loop inside one launch.
        compiler_params=pltpu.CompilerParams(
            dimension_semantics=("parallel",)),
    )(*inputs)
    return jnp.transpose(out, (0, 2, 1))                      # back to NCL


# ----------------------------------------------------------------------------
# Deterministic synthetic parameters (BN folded into scale/bias, eps=1e-5)
# ----------------------------------------------------------------------------
def _fold_bn(conv_b, gamma, beta, mean, var, eps=1e-5):
    s = gamma / jnp.sqrt(var + eps)
    return s, (conv_b - mean) * s + beta


def _init_conv_bn(key, cin, cout):
    ks = jax.random.split(key, 6)
    w = 0.05 * jax.random.normal(ks[0], (3, cin, cout), jnp.float32)
    cb = 0.05 * jax.random.normal(ks[1], (cout,), jnp.float32)
    gamma = 1.0 + 0.1 * jax.random.normal(ks[2], (cout,), jnp.float32)
    beta = 0.1 * jax.random.normal(ks[3], (cout,), jnp.float32)
    mean = 0.1 * jax.random.normal(ks[4], (cout,), jnp.float32)
    var = jax.random.uniform(ks[5], (cout,), jnp.float32, 0.5, 1.5)
    s, b = _fold_bn(cb, gamma, beta, mean, var)
    return w, s, b


def init_res_block(key, cin, cout):
    k1, k2, k3, k4 = jax.random.split(key, 4)
    w1, s1, b1 = _init_conv_bn(k1, cin, cout)
    w2, s2, b2 = _init_conv_bn(k2, cout, cout)
    if cin != cout:
        res_w = 0.05 * jax.random.normal(k3, (cin, cout), jnp.float32)
        res_b = 0.05 * jax.random.normal(k4, (cout,), jnp.float32)
    else:
        res_w, res_b = None, None
    return dict(w1=w1, s1=s1, b1=b1, w2=w2, s2=s2, b2=b2,
                res_w=res_w, res_b=res_b)


# ----------------------------------------------------------------------------
# Pure-JAX reference (for a numerical sanity check)
# ----------------------------------------------------------------------------
def res_block_ref(x_ncl, p):
    hi = jax.lax.Precision.HIGHEST
    x = jnp.transpose(x_ncl, (0, 2, 1))

    def conv3(h, w3):
        Lh = h.shape[1]
        hp = jnp.pad(h, ((0, 0), (1, 1), (0, 0)))
        return (jnp.einsum("nlc,co->nlo", hp[:, 0:Lh], w3[0], precision=hi)
                + jnp.einsum("nlc,co->nlo", hp[:, 1:Lh + 1], w3[1], precision=hi)
                + jnp.einsum("nlc,co->nlo", hp[:, 2:Lh + 2], w3[2], precision=hi))

    if p["res_w"] is not None:
        r = jnp.einsum("nlc,co->nlo", x, p["res_w"], precision=hi) + p["res_b"]
    else:
        r = x
    h = jnp.maximum(conv3(x, p["w1"]) * p["s1"] + p["b1"], 0.0)
    y = jnp.maximum(conv3(h, p["w2"]) * p["s2"] + p["b2"] + r, 0.0)
    return jnp.transpose(y, (0, 2, 1))


# ----------------------------------------------------------------------------
# Main
# ----------------------------------------------------------------------------
if __name__ == "__main__":
    key = jax.random.PRNGKey(0)
    k_x, k_b1, k_b2 = jax.random.split(key, 3)

    N, Cin, L = 2, 32, 64
    x = jax.random.normal(k_x, (N, Cin, L), jnp.float32)      # NCL, like PyTorch

    # Exercise both variants: identity residual (32->32) and 1x1-conv residual
    # (32->64), chained.
    block_same = init_res_block(k_b1, 32, 32)
    block_proj = init_res_block(k_b2, 32, 64)

    @jax.jit
    def fwd(inp):
        h = res_block_forward(inp, block_same)
        return res_block_forward(h, block_proj)

    out = fwd(x)
    jax.block_until_ready(out)

    ref = res_block_ref(res_block_ref(x, block_same), block_proj)
    err = float(jnp.max(jnp.abs(out - ref)))

    assert out.shape == (N, 64, L), out.shape
    assert bool(jnp.all(jnp.isfinite(out)))
    assert err < 1e-2, f"mismatch vs reference: max abs err = {err}"
    print("KERNEL_OK")
</pallas_src>

<mosaic_0001>
module attributes {stable_mosaic.version = 11 : i64} {
  func.func @kernel(%arg0: i32, %arg1: memref<1x64x32xf32, #tpu.memory_space<vmem>>, %arg2: memref<96x64xf32, #tpu.memory_space<vmem>>, %arg3: memref<1x64xf32, #tpu.memory_space<vmem>>, %arg4: memref<1x64xf32, #tpu.memory_space<vmem>>, %arg5: memref<192x64xf32, #tpu.memory_space<vmem>>, %arg6: memref<1x64xf32, #tpu.memory_space<vmem>>, %arg7: memref<1x64xf32, #tpu.memory_space<vmem>>, %arg8: memref<32x64xf32, #tpu.memory_space<vmem>>, %arg9: memref<1x64xf32, #tpu.memory_space<vmem>>, %arg10: memref<1x64x64xf32, #tpu.memory_space<vmem>>, %arg11: memref<64x96xf32, #tpu.memory_space<vmem>>, %arg12: memref<64x192xf32, #tpu.memory_space<vmem>>) attributes {dimension_semantics = [#tpu.dimension_semantics<parallel>], iteration_bounds = array<i64: 2>, scalar_prefetch = 0 : i64, scratch_operands = 2 : i64, tpu.core_type = #tpu.core_type<tc>, window_params = [{transform_indices = @transform_0, window_bounds = array<i64: 1, 64, 32>}, {pipeline_mode = #tpu.pipeline_mode<synchronous>, transform_indices = @transform_1, window_bounds = array<i64: 96, 64>}, {pipeline_mode = #tpu.pipeline_mode<synchronous>, transform_indices = @transform_2, window_bounds = array<i64: 1, 64>}, {pipeline_mode = #tpu.pipeline_mode<synchronous>, transform_indices = @transform_3, window_bounds = array<i64: 1, 64>}, {pipeline_mode = #tpu.pipeline_mode<synchronous>, transform_indices = @transform_4, window_bounds = array<i64: 192, 64>}, {pipeline_mode = #tpu.pipeline_mode<synchronous>, transform_indices = @transform_5, window_bounds = array<i64: 1, 64>}, {pipeline_mode = #tpu.pipeline_mode<synchronous>, transform_indices = @transform_6, window_bounds = array<i64: 1, 64>}, {pipeline_mode = #tpu.pipeline_mode<synchronous>, transform_indices = @transform_7, window_bounds = array<i64: 32, 64>}, {pipeline_mode = #tpu.pipeline_mode<synchronous>, transform_indices = @transform_8, window_bounds = array<i64: 1, 64>}, {transform_indices = @transform_9, window_bounds = array<i64: 1, 64, 64>}]} {
    %c0 = arith.constant 0 : index
    %c0_0 = arith.constant 0 : index
    %c0_1 = arith.constant 0 : index
    %0 = vector.load %arg1[%c0, %c0_0, %c0_1] : memref<1x64x32xf32, #tpu.memory_space<vmem>>, vector<1x64x32xf32>
    %1 = vector.shape_cast %0 : vector<1x64x32xf32> to vector<64x32xf32>
    %c0_2 = arith.constant 0 : index
    %c0_3 = arith.constant 0 : index
    %2 = vector.load %arg8[%c0_2, %c0_3] : memref<32x64xf32, #tpu.memory_space<vmem>>, vector<32x64xf32>
    %cst = arith.constant dense<0.000000e+00> : vector<64x64xf32>
    %3 = tpu.matmul %1, %2, %cst {dimension_numbers = #tpu.dot_dimension_numbers<[1], [0], [0], [1], [0, 0, 1, 1], [], []>} : vector<64x32xf32>, vector<32x64xf32>, vector<64x64xf32> -> vector<64x64xf32>
    %c0_4 = arith.constant 0 : index
    %c0_5 = arith.constant 0 : index
    %4 = vector.load %arg9[%c0_4, %c0_5] : memref<1x64xf32, #tpu.memory_space<vmem>>, vector<1x64xf32>
    %5 = vector.broadcast %4 : vector<1x64xf32> to vector<64x64xf32>
    %6 = arith.addf %3, %5 : vector<64x64xf32>
    %cst_6 = arith.constant 0.000000e+00 : f32
    %7 = vector.broadcast %cst_6 : f32 to vector<64x96xf32>
    %c0_7 = arith.constant 0 : index
    %c0_8 = arith.constant 0 : index
    %8 = vector.load %arg11[%c0_7, %c0_8] : memref<64x96xf32, #tpu.memory_space<vmem>>, vector<64x96xf32>
    tpu.vector_store %arg11[%c0_7, %c0_8], %7 {strides = array<i32>} : memref<64x96xf32, #tpu.memory_space<vmem>>, vector<64x96xf32>,
    %9 = vector.extract_strided_slice %1 {offsets = [0, 0], sizes = [63, 32], strides = [1, 1]} : vector<64x32xf32> to vector<63x32xf32>
    %c1 = arith.constant 1 : index
    %c0_9 = arith.constant 0 : index
    %10 = vector.load %arg11[%c1, %c0_9] : memref<64x96xf32, #tpu.memory_space<vmem>>, vector<63x32xf32>
    tpu.vector_store %arg11[%c1, %c0_9], %9 {strides = array<i32>} : memref<64x96xf32, #tpu.memory_space<vmem>>, vector<63x32xf32>,
    %c0_10 = arith.constant 0 : index
    %c32 = arith.constant 32 : index
    %11 = vector.load %arg11[%c0_10, %c32] : memref<64x96xf32, #tpu.memory_space<vmem>>, vector<64x32xf32>
    tpu.vector_store %arg11[%c0_10, %c32], %1 {strides = array<i32>} : memref<64x96xf32, #tpu.memory_space<vmem>>, vector<64x32xf32>,
    %12 = vector.extract_strided_slice %1 {offsets = [1, 0], sizes = [63, 32], strides = [1, 1]} : vector<64x32xf32> to vector<63x32xf32>
    %c0_11 = arith.constant 0 : index
    %c64 = arith.constant 64 : index
    %13 = vector.load %arg11[%c0_11, %c64] : memref<64x96xf32, #tpu.memory_space<vmem>>, vector<63x32xf32>
    tpu.vector_store %arg11[%c0_11, %c64], %12 {strides = array<i32>} : memref<64x96xf32, #tpu.memory_space<vmem>>, vector<63x32xf32>,
    %c0_12 = arith.constant 0 : index
    %c0_13 = arith.constant 0 : index
    %14 = vector.load %arg11[%c0_12, %c0_13] : memref<64x96xf32, #tpu.memory_space<vmem>>, vector<64x96xf32>
    %c0_14 = arith.constant 0 : index
    %c0_15 = arith.constant 0 : index
    %15 = vector.load %arg2[%c0_14, %c0_15] : memref<96x64xf32, #tpu.memory_space<vmem>>, vector<96x64xf32>
    %cst_16 = arith.constant dense<0.000000e+00> : vector<64x64xf32>
    %16 = tpu.matmul %14, %15, %cst_16 {dimension_numbers = #tpu.dot_dimension_numbers<[1], [0], [0], [1], [0, 0, 1, 1], [], []>} : vector<64x96xf32>, vector<96x64xf32>, vector<64x64xf32> -> vector<64x64xf32>
    %c0_17 = arith.constant 0 : index
    %c0_18 = arith.constant 0 : index
    %17 = vector.load %arg3[%c0_17, %c0_18] : memref<1x64xf32, #tpu.memory_space<vmem>>, vector<1x64xf32>
    %18 = vector.broadcast %17 : vector<1x64xf32> to vector<64x64xf32>
    %19 = arith.mulf %16, %18 : vector<64x64xf32>
    %c0_19 = arith.constant 0 : index
    %c0_20 = arith.constant 0 : index
    %20 = vector.load %arg4[%c0_19, %c0_20] : memref<1x64xf32, #tpu.memory_space<vmem>>, vector<1x64xf32>
    %21 = vector.broadcast %20 : vector<1x64xf32> to vector<64x64xf32>
    %22 = arith.addf %19, %21 : vector<64x64xf32>
    %cst_21 = arith.constant 0.000000e+00 : f32
    %23 = vector.broadcast %cst_21 : f32 to vector<64x64xf32>
    %24 = arith.maximumf %22, %23 : vector<64x64xf32>
    %cst_22 = arith.constant 0.000000e+00 : f32
    %25 = vector.broadcast %cst_22 : f32 to vector<64x192xf32>
    %c0_23 = arith.constant 0 : index
    %c0_24 = arith.constant 0 : index
    %26 = vector.load %arg12[%c0_23, %c0_24] : memref<64x192xf32, #tpu.memory_space<vmem>>, vector<64x192xf32>
    tpu.vector_store %arg12[%c0_23, %c0_24], %25 {strides = array<i32>} : memref<64x192xf32, #tpu.memory_space<vmem>>, vector<64x192xf32>,
    %27 = vector.extract_strided_slice %24 {offsets = [0, 0], sizes = [63, 64], strides = [1, 1]} : vector<64x64xf32> to vector<63x64xf32>
    %c1_25 = arith.constant 1 : index
    %c0_26 = arith.constant 0 : index
    %28 = vector.load %arg12[%c1_25, %c0_26] : memref<64x192xf32, #tpu.memory_space<vmem>>, vector<63x64xf32>
    tpu.vector_store %arg12[%c1_25, %c0_26], %27 {strides = array<i32>} : memref<64x192xf32, #tpu.memory_space<vmem>>, vector<63x64xf32>,
    %c0_27 = arith.constant 0 : index
    %c64_28 = arith.constant 64 : index
    %29 = vector.load %arg12[%c0_27, %c64_28] : memref<64x192xf32, #tpu.memory_space<vmem>>, vector<64x64xf32>
    tpu.vector_store %arg12[%c0_27, %c64_28], %24 {strides = array<i32>} : memref<64x192xf32, #tpu.memory_space<vmem>>, vector<64x64xf32>,
    %30 = vector.extract_strided_slice %24 {offsets = [1, 0], sizes = [63, 64], strides = [1, 1]} : vector<64x64xf32> to vector<63x64xf32>
    %c0_29 = arith.constant 0 : index
    %c128 = arith.constant 128 : index
    %31 = vector.load %arg12[%c0_29, %c128] : memref<64x192xf32, #tpu.memory_space<vmem>>, vector<63x64xf32>
    tpu.vector_store %arg12[%c0_29, %c128], %30 {strides = array<i32>} : memref<64x192xf32, #tpu.memory_space<vmem>>, vector<63x64xf32>,
    %c0_30 = arith.constant 0 : index
    %c0_31 = arith.constant 0 : index
    %32 = vector.load %arg12[%c0_30, %c0_31] : memref<64x192xf32, #tpu.memory_space<vmem>>, vector<64x192xf32>
    %c0_32 = arith.constant 0 : index
    %c0_33 = arith.constant 0 : index
    %33 = vector.load %arg5[%c0_32, %c0_33] : memref<192x64xf32, #tpu.memory_space<vmem>>, vector<192x64xf32>
    %cst_34 = arith.constant dense<0.000000e+00> : vector<64x64xf32>
    %34 = tpu.matmul %32, %33, %cst_34 {dimension_numbers = #tpu.dot_dimension_numbers<[1], [0], [0], [1], [0, 0, 1, 1], [], []>} : vector<64x192xf32>, vector<192x64xf32>, vector<64x64xf32> -> vector<64x64xf32>
    %c0_35 = arith.constant 0 : index
    %c0_36 = arith.constant 0 : index
    %35 = vector.load %arg6[%c0_35, %c0_36] : memref<1x64xf32, #tpu.memory_space<vmem>>, vector<1x64xf32>
    %36 = vector.broadcast %35 : vector<1x64xf32> to vector<64x64xf32>
    %37 = arith.mulf %34, %36 : vector<64x64xf32>
    %c0_37 = arith.constant 0 : index
    %c0_38 = arith.constant 0 : index
    %38 = vector.load %arg7[%c0_37, %c0_38] : memref<1x64xf32, #tpu.memory_space<vmem>>, vector<1x64xf32>
    %39 = vector.broadcast %38 : vector<1x64xf32> to vector<64x64xf32>
    %40 = arith.addf %37, %39 : vector<64x64xf32>
    %41 = arith.addf %40, %6 : vector<64x64xf32>
    %cst_39 = arith.constant 0.000000e+00 : f32
    %42 = vector.broadcast %cst_39 : f32 to vector<64x64xf32>
    %43 = arith.maximumf %41, %42 : vector<64x64xf32>
    %c0_40 = arith.constant 0 : index
    %c0_41 = arith.constant 0 : index
    %c0_42 = arith.constant 0 : index
    %44 = vector.load %arg10[%c0_40, %c0_41, %c0_42] : memref<1x64x64xf32, #tpu.memory_space<vmem>>, vector<1x64x64xf32>
    %45 = vector.shape_cast %44 : vector<1x64x64xf32> to vector<64x64xf32>
    %46 = vector.shape_cast %43 : vector<64x64xf32> to vector<1x64x64xf32>
    tpu.vector_store %arg10[%c0_40, %c0_41, %c0_42], %46 {strides = array<i32>} : memref<1x64x64xf32, #tpu.memory_space<vmem>>, vector<1x64x64xf32>,
    return
  }
  func.func @transform_0(%arg0: i32) -> (i32, i32, i32) {
    %c0_i32 = arith.constant 0 : i32
    %c0_i32_0 = arith.constant 0 : i32
    %c0_i32_1 = arith.constant 0 : i32
    return %arg0, %c0_i32, %c0_i32_0 : i32, i32, i32
  }
  func.func @transform_1(%arg0: i32) -> (i32, i32) {
    %c0_i32 = arith.constant 0 : i32
    %c0_i32_0 = arith.constant 0 : i32
    %c0_i32_1 = arith.constant 0 : i32
    return %c0_i32, %c0_i32_0 : i32, i32
  }
  func.func @transform_2(%arg0: i32) -> (i32, i32) {
    %c0_i32 = arith.constant 0 : i32
    %c0_i32_0 = arith.constant 0 : i32
    %c0_i32_1 = arith.constant 0 : i32
    return %c0_i32, %c0_i32_0 : i32, i32
  }
  func.func @transform_3(%arg0: i32) -> (i32, i32) {
    %c0_i32 = arith.constant 0 : i32
    %c0_i32_0 = arith.constant 0 : i32
    %c0_i32_1 = arith.constant 0 : i32
    return %c0_i32, %c0_i32_0 : i32, i32
  }
  func.func @transform_4(%arg0: i32) -> (i32, i32) {
    %c0_i32 = arith.constant 0 : i32
    %c0_i32_0 = arith.constant 0 : i32
    %c0_i32_1 = arith.constant 0 : i32
    return %c0_i32, %c0_i32_0 : i32, i32
  }
  func.func @transform_5(%arg0: i32) -> (i32, i32) {
    %c0_i32 = arith.constant 0 : i32
    %c0_i32_0 = arith.constant 0 : i32
    %c0_i32_1 = arith.constant 0 : i32
    return %c0_i32, %c0_i32_0 : i32, i32
  }
  func.func @transform_6(%arg0: i32) -> (i32, i32) {
    %c0_i32 = arith.constant 0 : i32
    %c0_i32_0 = arith.constant 0 : i32
    %c0_i32_1 = arith.constant 0 : i32
    return %c0_i32, %c0_i32_0 : i32, i32
  }
  func.func @transform_7(%arg0: i32) -> (i32, i32) {
    %c0_i32 = arith.constant 0 : i32
    %c0_i32_0 = arith.constant 0 : i32
    %c0_i32_1 = arith.constant 0 : i32
    return %c0_i32, %c0_i32_0 : i32, i32
  }
  func.func @transform_8(%arg0: i32) -> (i32, i32) {
    %c0_i32 = arith.constant 0 : i32
    %c0_i32_0 = arith.constant 0 : i32
    %c0_i32_1 = arith.constant 0 : i32
    return %c0_i32, %c0_i32_0 : i32, i32
  }
  func.func @transform_9(%arg0: i32) -> (i32, i32, i32) {
    %c0_i32 = arith.constant 0 : i32
    %c0_i32_0 = arith.constant 0 : i32
    %c0_i32_1 = arith.constant 0 : i32
    return %arg0, %c0_i32, %c0_i32_0 : i32, i32, i32
  }
}

module attributes {stable_mosaic.version = 11 : i64} {
  func.func @kernel(%arg0: i32, %arg1: memref<1x64x32xf32, #tpu.memory_space<vmem>>, %arg2: memref<96x32xf32, #tpu.memory_space<vmem>>, %arg3: memref<1x32xf32, #tpu.memory_space<vmem>>, %arg4: memref<1x32xf32, #tpu.memory_space<vmem>>, %arg5: memref<96x32xf32, #tpu.memory_space<vmem>>, %arg6: memref<1x32xf32, #tpu.memory_space<vmem>>, %arg7: memref<1x32xf32, #tpu.memory_space<vmem>>, %arg8: memref<1x64x32xf32, #tpu.memory_space<vmem>>, %arg9: memref<64x96xf32, #tpu.memory_space<vmem>>, %arg10: memref<64x96xf32, #tpu.memory_space<vmem>>) attributes {dimension_semantics = [#tpu.dimension_semantics<parallel>], iteration_bounds = array<i64: 2>, scalar_prefetch = 0 : i64, scratch_operands = 2 : i64, tpu.core_type = #tpu.core_type<tc>, window_params = [{transform_indices = @transform_0, window_bounds = array<i64: 1, 64, 32>}, {pipeline_mode = #tpu.pipeline_mode<synchronous>, transform_indices = @transform_1, window_bounds = array<i64: 96, 32>}, {pipeline_mode = #tpu.pipeline_mode<synchronous>, transform_indices = @transform_2, window_bounds = array<i64: 1, 32>}, {pipeline_mode = #tpu.pipeline_mode<synchronous>, transform_indices = @transform_3, window_bounds = array<i64: 1, 32>}, {pipeline_mode = #tpu.pipeline_mode<synchronous>, transform_indices = @transform_4, window_bounds = array<i64: 96, 32>}, {pipeline_mode = #tpu.pipeline_mode<synchronous>, transform_indices = @transform_5, window_bounds = array<i64: 1, 32>}, {pipeline_mode = #tpu.pipeline_mode<synchronous>, transform_indices = @transform_6, window_bounds = array<i64: 1, 32>}, {transform_indices = @transform_7, window_bounds = array<i64: 1, 64, 32>}]} {
    %c0 = arith.constant 0 : index
    %c0_0 = arith.constant 0 : index
    %c0_1 = arith.constant 0 : index
    %0 = vector.load %arg1[%c0, %c0_0, %c0_1] : memref<1x64x32xf32, #tpu.memory_space<vmem>>, vector<1x64x32xf32>
    %1 = vector.shape_cast %0 : vector<1x64x32xf32> to vector<64x32xf32>
    %cst = arith.constant 0.000000e+00 : f32
    %2 = vector.broadcast %cst : f32 to vector<64x96xf32>
    %c0_2 = arith.constant 0 : index
    %c0_3 = arith.constant 0 : index
    %3 = vector.load %arg9[%c0_2, %c0_3] : memref<64x96xf32, #tpu.memory_space<vmem>>, vector<64x96xf32>
    tpu.vector_store %arg9[%c0_2, %c0_3], %2 {strides = array<i32>} : memref<64x96xf32, #tpu.memory_space<vmem>>, vector<64x96xf32>,
    %4 = vector.extract_strided_slice %1 {offsets = [0, 0], sizes = [63, 32], strides = [1, 1]} : vector<64x32xf32> to vector<63x32xf32>
    %c1 = arith.constant 1 : index
    %c0_4 = arith.constant 0 : index
    %5 = vector.load %arg9[%c1, %c0_4] : memref<64x96xf32, #tpu.memory_space<vmem>>, vector<63x32xf32>
    tpu.vector_store %arg9[%c1, %c0_4], %4 {strides = array<i32>} : memref<64x96xf32, #tpu.memory_space<vmem>>, vector<63x32xf32>,
    %c0_5 = arith.constant 0 : index
    %c32 = arith.constant 32 : index
    %6 = vector.load %arg9[%c0_5, %c32] : memref<64x96xf32, #tpu.memory_space<vmem>>, vector<64x32xf32>
    tpu.vector_store %arg9[%c0_5, %c32], %1 {strides = array<i32>} : memref<64x96xf32, #tpu.memory_space<vmem>>, vector<64x32xf32>,
    %7 = vector.extract_strided_slice %1 {offsets = [1, 0], sizes = [63, 32], strides = [1, 1]} : vector<64x32xf32> to vector<63x32xf32>
    %c0_6 = arith.constant 0 : index
    %c64 = arith.constant 64 : index
    %8 = vector.load %arg9[%c0_6, %c64] : memref<64x96xf32, #tpu.memory_space<vmem>>, vector<63x32xf32>
    tpu.vector_store %arg9[%c0_6, %c64], %7 {strides = array<i32>} : memref<64x96xf32, #tpu.memory_space<vmem>>, vector<63x32xf32>,
    %c0_7 = arith.constant 0 : index
    %c0_8 = arith.constant 0 : index
    %9 = vector.load %arg9[%c0_7, %c0_8] : memref<64x96xf32, #tpu.memory_space<vmem>>, vector<64x96xf32>
    %c0_9 = arith.constant 0 : index
    %c0_10 = arith.constant 0 : index
    %10 = vector.load %arg2[%c0_9, %c0_10] : memref<96x32xf32, #tpu.memory_space<vmem>>, vector<96x32xf32>
    %cst_11 = arith.constant dense<0.000000e+00> : vector<64x32xf32>
    %11 = tpu.matmul %9, %10, %cst_11 {dimension_numbers = #tpu.dot_dimension_numbers<[1], [0], [0], [1], [0, 0, 1, 1], [], []>} : vector<64x96xf32>, vector<96x32xf32>, vector<64x32xf32> -> vector<64x32xf32>
    %c0_12 = arith.constant 0 : index
    %c0_13 = arith.constant 0 : index
    %12 = vector.load %arg3[%c0_12, %c0_13] : memref<1x32xf32, #tpu.memory_space<vmem>>, vector<1x32xf32>
    %13 = vector.broadcast %12 : vector<1x32xf32> to vector<64x32xf32>
    %14 = arith.mulf %11, %13 : vector<64x32xf32>
    %c0_14 = arith.constant 0 : index
    %c0_15 = arith.constant 0 : index
    %15 = vector.load %arg4[%c0_14, %c0_15] : memref<1x32xf32, #tpu.memory_space<vmem>>, vector<1x32xf32>
    %16 = vector.broadcast %15 : vector<1x32xf32> to vector<64x32xf32>
    %17 = arith.addf %14, %16 : vector<64x32xf32>
    %cst_16 = arith.constant 0.000000e+00 : f32
    %18 = vector.broadcast %cst_16 : f32 to vector<64x32xf32>
    %19 = arith.maximumf %17, %18 : vector<64x32xf32>
    %cst_17 = arith.constant 0.000000e+00 : f32
    %20 = vector.broadcast %cst_17 : f32 to vector<64x96xf32>
    %c0_18 = arith.constant 0 : index
    %c0_19 = arith.constant 0 : index
    %21 = vector.load %arg10[%c0_18, %c0_19] : memref<64x96xf32, #tpu.memory_space<vmem>>, vector<64x96xf32>
    tpu.vector_store %arg10[%c0_18, %c0_19], %20 {strides = array<i32>} : memref<64x96xf32, #tpu.memory_space<vmem>>, vector<64x96xf32>,
    %22 = vector.extract_strided_slice %19 {offsets = [0, 0], sizes = [63, 32], strides = [1, 1]} : vector<64x32xf32> to vector<63x32xf32>
    %c1_20 = arith.constant 1 : index
    %c0_21 = arith.constant 0 : index
    %23 = vector.load %arg10[%c1_20, %c0_21] : memref<64x96xf32, #tpu.memory_space<vmem>>, vector<63x32xf32>
    tpu.vector_store %arg10[%c1_20, %c0_21], %22 {strides = array<i32>} : memref<64x96xf32, #tpu.memory_space<vmem>>, vector<63x32xf32>,
    %c0_22 = arith.constant 0 : index
    %c32_23 = arith.constant 32 : index
    %24 = vector.load %arg10[%c0_22, %c32_23] : memref<64x96xf32, #tpu.memory_space<vmem>>, vector<64x32xf32>
    tpu.vector_store %arg10[%c0_22, %c32_23], %19 {strides = array<i32>} : memref<64x96xf32, #tpu.memory_space<vmem>>, vector<64x32xf32>,
    %25 = vector.extract_strided_slice %19 {offsets = [1, 0], sizes = [63, 32], strides = [1, 1]} : vector<64x32xf32> to vector<63x32xf32>
    %c0_24 = arith.constant 0 : index
    %c64_25 = arith.constant 64 : index
    %26 = vector.load %arg10[%c0_24, %c64_25] : memref<64x96xf32, #tpu.memory_space<vmem>>, vector<63x32xf32>
    tpu.vector_store %arg10[%c0_24, %c64_25], %25 {strides = array<i32>} : memref<64x96xf32, #tpu.memory_space<vmem>>, vector<63x32xf32>,
    %c0_26 = arith.constant 0 : index
    %c0_27 = arith.constant 0 : index
    %27 = vector.load %arg10[%c0_26, %c0_27] : memref<64x96xf32, #tpu.memory_space<vmem>>, vector<64x96xf32>
    %c0_28 = arith.constant 0 : index
    %c0_29 = arith.constant 0 : index
    %28 = vector.load %arg5[%c0_28, %c0_29] : memref<96x32xf32, #tpu.memory_space<vmem>>, vector<96x32xf32>
    %cst_30 = arith.constant dense<0.000000e+00> : vector<64x32xf32>
    %29 = tpu.matmul %27, %28, %cst_30 {dimension_numbers = #tpu.dot_dimension_numbers<[1], [0], [0], [1], [0, 0, 1, 1], [], []>} : vector<64x96xf32>, vector<96x32xf32>, vector<64x32xf32> -> vector<64x32xf32>
    %c0_31 = arith.constant 0 : index
    %c0_32 = arith.constant 0 : index
    %30 = vector.load %arg6[%c0_31, %c0_32] : memref<1x32xf32, #tpu.memory_space<vmem>>, vector<1x32xf32>
    %31 = vector.broadcast %30 : vector<1x32xf32> to vector<64x32xf32>
    %32 = arith.mulf %29, %31 : vector<64x32xf32>
    %c0_33 = arith.constant 0 : index
    %c0_34 = arith.constant 0 : index
    %33 = vector.load %arg7[%c0_33, %c0_34] : memref<1x32xf32, #tpu.memory_space<vmem>>, vector<1x32xf32>
    %34 = vector.broadcast %33 : vector<1x32xf32> to vector<64x32xf32>
    %35 = arith.addf %32, %34 : vector<64x32xf32>
    %36 = arith.addf %35, %1 : vector<64x32xf32>
    %cst_35 = arith.constant 0.000000e+00 : f32
    %37 = vector.broadcast %cst_35 : f32 to vector<64x32xf32>
    %38 = arith.maximumf %36, %37 : vector<64x32xf32>
    %c0_36 = arith.constant 0 : index
    %c0_37 = arith.constant 0 : index
    %c0_38 = arith.constant 0 : index
    %39 = vector.load %arg8[%c0_36, %c0_37, %c0_38] : memref<1x64x32xf32, #tpu.memory_space<vmem>>, vector<1x64x32xf32>
    %40 = vector.shape_cast %39 : vector<1x64x32xf32> to vector<64x32xf32>
    %41 = vector.shape_cast %38 : vector<64x32xf32> to vector<1x64x32xf32>
    tpu.vector_store %arg8[%c0_36, %c0_37, %c0_38], %41 {strides = array<i32>} : memref<1x64x32xf32, #tpu.memory_space<vmem>>, vector<1x64x32xf32>,
    return
  }
  func.func @transform_0(%arg0: i32) -> (i32, i32, i32) {
    %c0_i32 = arith.constant 0 : i32
    %c0_i32_0 = arith.constant 0 : i32
    %c0_i32_1 = arith.constant 0 : i32
    return %arg0, %c0_i32, %c0_i32_0 : i32, i32, i32
  }
  func.func @transform_1(%arg0: i32) -> (i32, i32) {
    %c0_i32 = arith.constant 0 : i32
    %c0_i32_0 = arith.constant 0 : i32
    %c0_i32_1 = arith.constant 0 : i32
    return %c0_i32, %c0_i32_0 : i32, i32
  }
  func.func @transform_2(%arg0: i32) -> (i32, i32) {
    %c0_i32 = arith.constant 0 : i32
    %c0_i32_0 = arith.constant 0 : i32
    %c0_i32_1 = arith.constant 0 : i32
    return %c0_i32, %c0_i32_0 : i32, i32
  }
  func.func @transform_3(%arg0: i32) -> (i32, i32) {
    %c0_i32 = arith.constant 0 : i32
    %c0_i32_0 = arith.constant 0 : i32
    %c0_i32_1 = arith.constant 0 : i32
    return %c0_i32, %c0_i32_0 : i32, i32
  }
  func.func @transform_4(%arg0: i32) -> (i32, i32) {
    %c0_i32 = arith.constant 0 : i32
    %c0_i32_0 = arith.constant 0 : i32
    %c0_i32_1 = arith.constant 0 : i32
    return %c0_i32, %c0_i32_0 : i32, i32
  }
  func.func @transform_5(%arg0: i32) -> (i32, i32) {
    %c0_i32 = arith.constant 0 : i32
    %c0_i32_0 = arith.constant 0 : i32
    %c0_i32_1 = arith.constant 0 : i32
    return %c0_i32, %c0_i32_0 : i32, i32
  }
  func.func @transform_6(%arg0: i32) -> (i32, i32) {
    %c0_i32 = arith.constant 0 : i32
    %c0_i32_0 = arith.constant 0 : i32
    %c0_i32_1 = arith.constant 0 : i32
    return %c0_i32, %c0_i32_0 : i32, i32
  }
  func.func @transform_7(%arg0: i32) -> (i32, i32, i32) {
    %c0_i32 = arith.constant 0 : i32
    %c0_i32_0 = arith.constant 0 : i32
    %c0_i32_1 = arith.constant 0 : i32
    return %arg0, %c0_i32, %c0_i32_0 : i32, i32, i32
  }
}

</mosaic_0001>

<bundles_post_ra>
// kernel: fwd.2
= control target key start
LH: loop header
LB: loop body
LE: loop exit
PB: predicated region body
PF: predicated region fallthrough
CT: control target
= control target key end

     0   :  { %s1169_s24 = smov 0   ;;  %s1485_s0 = inlined_call_operand.vmem [shape: f32[2,64,32], index: 0, kind: input, shape index: {}]   ;;  %s1486_s1 = inlined_call_operand.vmem [shape: f32[96,32], index: 1, kind: input, shape index: {}]   ;;  %s1487_s2 = inlined_call_operand.vmem [shape: f32[1,32], index: 2, kind: input, shape index: {}]   ;;  %s1488_s3 = inlined_call_operand.vmem [shape: f32[1,32], index: 3, kind: input, shape index: {}]   ;;  %s1489_s4 = inlined_call_operand.vmem [shape: f32[96,32], index: 4, kind: input, shape index: {}]   ;;  %s1490_s5 = inlined_call_operand.vmem [shape: f32[1,32], index: 5, kind: input, shape index: {}]   ;;  %s1491_s6 = inlined_call_operand.vmem [shape: f32[1,32], index: 6, kind: input, shape index: {}]   ;;  %s1492_s7 = inlined_call_operand.vmem [shape: f32[2,64,32], index: 7, kind: output, shape index: {}]  }
   0x1 LB: > { %s914_s25 = sadd.s32 4294967295, %s1124_s24   ;;  %p918_p0 = scmp.ge.s32.totalorder %s1124_s24, 1  ;;  %s1124_s24 = sphi %s1169_s24, %s17_s24  }
   0x2   : > { %p237_p1 = scmp.lt.s32.totalorder %s1124_s24, 3 }
   0x4   : > { %p238_p2 = pnand %p918_p0, %p237_p1 }
   0x5   : > { %p269_p3 = scmp.lt.s32.totalorder (!%p238_p2), %s914_s25, 1  ;;  %v389_v0 = vld [vmem:[%s1486_s1] sm:$0xff] (!%p238_p2)  ;;  %v390_v1 = vld [vmem:[%s1486_s1 + $0x8] sm:$0xff] (!%p238_p2)  ;;  %v391_v2 = vld [vmem:[%s1486_s1 + $0x10] sm:$0xff] (!%p238_p2)  ;;  %vm287_vm0 = vcmask (!%p238_p2), 785408   ;;  %v1126_v6 = vmov (!%p238_p2), 0.0  }
   0x6   : > { %241 = sbr.rel (%p238_p2) target bundleno = 746 (0x2ea), region = 48  ;;  %v1059_v3 = vpack.c.bf16 (!%p238_p2), %v390_v1, %v389_v0  ;;  %v392_v4 = vld [vmem:[%s1486_s1 + $0x18] sm:$0xff] (!%p238_p2)  ;;  %289 = vst.msk [vmem:[#allocation2 + $0x8] sm:$0xff] (!%p238_p2), %vm287_vm0, %v1126_v6  ;;  %290 = vst.msk [vmem:[#allocation2 + $0x10] sm:$0xff] (!%p238_p2), %vm287_vm0, %v1126_v6  ;;  %v393_v7 = vld [vmem:[%s1486_s1 + $0x20] sm:$0xff] (!%p238_p2)  ;;  %vm296_vm1 = vcmask (!%p238_p2), 261120  }
   0x7   : > { %v1063_v5 = vpack.c.bf16 (!%p238_p2), %v392_v4, %v391_v2  ;;  %291 = vst.msk [vmem:[#allocation2 + $0x18] sm:$0xff] (!%p238_p2), %vm287_vm0, %v1126_v6  ;;  %288 = vst.msk [vmem:[#allocation2] sm:$0xff] (!%p238_p2), %vm287_vm0, %v1126_v6  ;;  %v394_v8 = vld [vmem:[%s1486_s1 + $0x28] sm:$0xff] (!%p238_p2)  ;;  %v395_v10 = vld [vmem:[%s1486_s1 + $0x30] sm:$0xff] (!%p238_p2)  ;;  %s1127_s23 = smov (!%p238_p2), 32   ;;  %s1128_s30 = smov (!%p238_p2), 64  }
   0x8   : > { %292 = vst.msk [vmem:[#allocation2 + $0x20] sm:$0xff] (!%p238_p2), %vm287_vm0, %v1126_v6  ;;  %293 = vst.msk [vmem:[#allocation2 + $0x28] sm:$0xff] (!%p238_p2), %vm287_vm0, %v1126_v6  ;;  %1060 = vmatprep.subr.bf16.mxu0 (!%p238_p2), %v1059_v3  ;;  %v1067_v9 = vpack.c.bf16 (!%p238_p2), %v394_v8, %v393_v7  ;;  %v396_v11 = vld [vmem:[%s1486_s1 + $0x38] sm:$0xff] (!%p238_p2)  ;;  %v397_v20 = vld [vmem:[%s1486_s1 + $0x40] sm:$0xff] (!%p238_p2)  ;;  %vm304_vm2 = vcmask (!%p238_p2), 260096   ;;  %vm338_vm3 = vcmask (!%p238_p2), 523520  }
   0x9   : > { %294 = vst.msk [vmem:[#allocation2 + $0x30] sm:$0xff] (!%p238_p2), %vm287_vm0, %v1126_v6  ;;  %295 = vst.msk [vmem:[#allocation2 + $0x38] sm:$0xff] (!%p238_p2), %vm287_vm0, %v1126_v6  ;;  %1062 = vmatpush3.bf16.msra.mxu0 (!%p238_p2), %v1059_v3  ;;  %v1071_v19 = vpack.c.bf16 (!%p238_p2), %v396_v11, %v395_v10  ;;  %v398_v21 = vld [vmem:[%s1486_s1 + $0x48] sm:$0xff] (!%p238_p2)  ;;  %v399_v23 = vld [vmem:[%s1486_s1 + $0x50] sm:$0xff] (!%p238_p2)  ;;  %vm371_vm4 = vcmask (!%p238_p2), 785921   ;;  %vm373_vm5 = vcmask (!%p238_p2), 785920  }
   0xa   : > { %568 = vst.msk [vmem:[#allocation3] sm:$0xff] (!%p238_p2), %vm287_vm0, %v1126_v6  ;;  %569 = vst.msk [vmem:[#allocation3 + $0x8] sm:$0xff] (!%p238_p2), %vm287_vm0, %v1126_v6  ;;  %1064 = vmatprep.subr.bf16.mxu0 (!%p238_p2), %v1063_v5  ;;  %v1075_v22 = vpack.c.bf16 (!%p238_p2), %v398_v21, %v397_v20  ;;  %v400_v24 = vld [vmem:[%s1486_s1 + $0x58] sm:$0xff] (!%p238_p2)  ;;  %v664_v51 = vld [vmem:[%s1489_s4] sm:$0xff] (!%p238_p2) }
   0xb   : > { %570 = vst.msk [vmem:[#allocation3 + $0x10] sm:$0xff] (!%p238_p2), %vm287_vm0, %v1126_v6  ;;  %571 = vst.msk [vmem:[#allocation3 + $0x18] sm:$0xff] (!%p238_p2), %vm287_vm0, %v1126_v6  ;;  %v1079_v25 = vpack.c.bf16 (!%p238_p2), %v400_v24, %v399_v23  ;;  %v665_v52 = vld [vmem:[%s1489_s4 + $0x8] sm:$0xff] (!%p238_p2)  ;;  %v666_v54 = vld [vmem:[%s1489_s4 + $0x10] sm:$0xff] (!%p238_p2) }
   0xc   : > { %572 = vst.msk [vmem:[#allocation3 + $0x20] sm:$0xff] (!%p238_p2), %vm287_vm0, %v1126_v6  ;;  %573 = vst.msk [vmem:[#allocation3 + $0x28] sm:$0xff] (!%p238_p2), %vm287_vm0, %v1126_v6  ;;  %v1083_v53 = vpack.c.bf16 (!%p238_p2), %v665_v52, %v664_v51  ;;  %v667_v55 = vld [vmem:[%s1489_s4 + $0x18] sm:$0xff] (!%p238_p2)  ;;  %v1350_v57 = vld [vmem:[%s1487_s2] ss:$0 sm:$0xff] (!%p238_p2) }
   0xd   : > { %s1494_s25 = smov (!%p269_p3, %s914_s25), 1  ;;  %574 = vst.msk [vmem:[#allocation3 + $0x30] sm:$0xff] %vm287_vm0, %v1126_v6  ;;  %575 = vst.msk [vmem:[#allocation3 + $0x38] sm:$0xff] %vm287_vm0, %v1126_v6  ;;  %1066 = vmatpush3.bf16.msra.mxu0 %v1063_v5  ;;  %v1087_v56 = vpack.c.bf16 %v667_v55, %v666_v54  ;;  %v1355_v59 = vld [vmem:[%s1488_s3] ss:$0 sm:$0xff]  ;;  %v669_v61 = vld [vmem:[%s1489_s4 + $0x28] sm:$0xff] }
   0xe   : > { %s945_s15 = sshll.u32 %s1494_s25, 6  ;;  %1068 = vmatprep.subr.bf16.mxu0 %v1067_v9  ;;  %1084 = vmatprep.subr.bf16.mxu1 %v1083_v53  ;;  %v668_v60 = vld [vmem:[%s1489_s4 + $0x20] sm:$0xff]  ;;  %v670_v4 = vld [vmem:[%s1489_s4 + $0x30] sm:$0xff]  ;;  %v671_v5 = vld [vmem:[%s1489_s4 + $0x38] sm:$0xff] }
   0xf   : > { %s1219_s18 = scalar_lea.vmem %s1485_s0, %s945_s15  ;;  %1086 = vmatpush3.bf16.msra.mxu1 %v1083_v53  ;;  %v1091_v0 = vpack.c.bf16 %v669_v61, %v668_v60  ;;  %v1095_v7 = vpack.c.bf16 %v671_v5, %v670_v4  ;;  %v672_v10 = vld [vmem:[%s1489_s4 + $0x40] sm:$0xff]  ;;  %v673_v11 = vld [vmem:[%s1489_s4 + $0x48] sm:$0xff]  ;;  %s1457_s8 = scalar_lea.vmem %s1492_s7, %s945_s15 }
  0x10   : > { %v1228_v12 = vld [vmem:[%s1219_s18 + $0x10] sm:$0xff]  ;;  %v1231_v13 = vld [vmem:[%s1219_s18] sm:$0xff]  ;;  %v1234_v14 = vld [vmem:[%s1219_s18 + $0x8] sm:$0xff]  ;;  %1088 = vmatprep.subr.bf16.mxu1 %v1087_v56  ;;  %v1099_v21 = vpack.c.bf16 %v673_v11, %v672_v10 }
  0x11   : > { %318 = vrot.lane.b32.xlu1 %v1228_v12, %s1127_s23  ;;  %314 = vrot.lane.b32.xlu0 %v1231_v13, %s1127_s23  ;;  %v1241_v15 = vld [vmem:[%s1219_s18 + $0x20] sm:$0xff]  ;;  %v1244_v16 = vld [vmem:[%s1219_s18 + $0x18] sm:$0xff]  ;;  %298 = vst.msk [vmem:[#allocation2 + $0x9] sm:$0xff] %vm296_vm1, %v1234_v14  ;;  %299 = vst.msk [vmem:[#allocation2 + $0x11] sm:$0xff] %vm296_vm1, %v1228_v12 }
  0x12   : > { %297 = vst.msk [vmem:[#allocation2 + $0x1] sm:$0xff] %vm296_vm1, %v1231_v13  ;;  %v1253_v17 = vld [vmem:[%s1219_s18 + $0x30] sm:$0xff]  ;;  %v1256_v18 = vld [vmem:[%s1219_s18 + $0x28] sm:$0xff]  ;;  %300 = vst.msk [vmem:[#allocation2 + $0x19] sm:$0xff] %vm296_vm1, %v1244_v16  ;;  %1070 = vmatpush3.bf16.msra.mxu0 %v1067_v9 }
  0x13   : > { %301 = vst.msk [vmem:[#allocation2 + $0x21] sm:$0xff] %vm296_vm1, %v1241_v15  ;;  %302 = vst.msk [vmem:[#allocation2 + $0x29] sm:$0xff] %vm296_vm1, %v1256_v18  ;;  %1072 = vmatprep.subr.bf16.mxu0 %v1071_v19  ;;  %v1291_v26 = vld [vmem:[%s1219_s18 + $0x38] sm:$0xff]  ;;  %1090 = vmatpush3.bf16.msra.mxu1 %v1087_v56 }
  0x14   : > { %303 = vst.msk [vmem:[#allocation2 + $0x31] sm:$0xff] %vm296_vm1, %v1253_v17  ;;  %1092 = vmatprep.subr.bf16.mxu1 %v1091_v0 }
  0x15   : > { %347 = vrot.lane.b32.xlu1 %v1231_v13, %s1128_s30  ;;  %316 = vrot.lane.b32.xlu0 %v1234_v14, %s1127_s23  ;;  %305 = vst.msk [vmem:[#allocation2 + $0x39] sm:$0x7f] %vm304_vm2, %v1291_v26 }
  0x16   : > { %1074 = vmatpush3.bf16.msra.mxu0 %v1071_v19 }
  0x17   : > { %1076 = vmatprep.subr.bf16.mxu0 %v1075_v22  ;;  %1094 = vmatpush3.bf16.msra.mxu1 %v1091_v0 }
  0x18   : > { %1096 = vmatprep.subr.bf16.mxu1 %v1095_v7 }
  0x19   : > { %351 = vrot.lane.b32.xlu1 %v1228_v12, %s1128_s30  ;;  %349 = vrot.lane.b32.xlu0 %v1234_v14, %s1128_s30 }
  0x1a   : > { %1078 = vmatpush3.bf16.msra.mxu0 %v1075_v22 }
  0x1b   : > { %1080 = vmatprep.subr.bf16.mxu0 %v1079_v25  ;;  %1098 = vmatpush3.bf16.msra.mxu1 %v1095_v7  ;;  %v941_v7 = vld [vmem:[%s1490_s5] ss:$0 sm:$0xff] }
  0x1c   : > { %1100 = vmatprep.subr.bf16.mxu1 %v1099_v21 }
  0x1d   : > { %322 = vrot.lane.b32.xlu1 %v1241_v15, %s1127_s23  ;;  %320 = vrot.lane.b32.xlu0 %v1244_v16, %s1127_s23 }
  0x1e   : > { %1082 = vmatpush3.bf16.msra.mxu0 %v1079_v25  ;;  %v674_v25 = vld [vmem:[%s1489_s4 + $0x50] sm:$0xff] }
  0x1f   : > { %1102 = vmatpush3.bf16.msra.mxu1 %v1099_v21 }
  0x21   : > { %355 = vrot.lane.b32.xlu1 %v1241_v15, %s1128_s30  ;;  %353 = vrot.lane.b32.xlu0 %v1244_v16, %s1128_s30 }
  0x25   : > { %326 = vrot.lane.b32.xlu1 %v1253_v17, %s1127_s23  ;;  %324 = vrot.lane.b32.xlu0 %v1256_v18, %s1127_s23 }
  0x29   : > { %359 = vrot.lane.b32.xlu1 %v1253_v17, %s1128_s30  ;;  %357 = vrot.lane.b32.xlu0 %v1256_v18, %s1128_s30 }
  0x2d   : > { %328 = vrot.lane.b32.xlu0 %v1291_v26, %s1127_s23  ;;  %361 = vrot.lane.b32.xlu1 %v1291_v26, %s1128_s30 }
  0x83   : > { %v319_v27 = vpop.permute.xlu1 %318  ;;  %v315_v28 = vpop.permute.xlu0 %314 }
  0x84   : > { %341 = vst.msk [vmem:[#allocation2 + $0x10] sm:$0xff] %vm338_vm3, %v319_v27  ;;  %339 = vst.msk [vmem:[#allocation2] sm:$0xff] %vm338_vm3, %v315_v28  ;;  %v675_v27 = vld [vmem:[%s1489_s4 + $0x58] sm:$0xff] }
  0x87   : > { %v348_v29 = vpop.permute.xlu1 %347  ;;  %v317_v30 = vpop.permute.xlu0 %316 }
  0x88   : > { %372 = vst.msk [vmem:[#allocation2 - $0x1] sm:$0xfe] %vm371_vm4, %v348_v29  ;;  %v1103_v29 = vpack.c.bf16 %v675_v27, %v674_v25 }
  0x89   : > { %340 = vst.msk [vmem:[#allocation2 + $0x8] sm:$0xff] %vm338_vm3, %v317_v30 }
  0x8a   : > { %1104 = vmatprep.subr.bf16.mxu1 %v1103_v29 }
  0x8b   : > { %v352_v31 = vpop.permute.xlu1 %351  ;;  %v350_v32 = vpop.permute.xlu0 %349  ;;  %1106 = vmatpush3.bf16.msra.mxu1 %v1103_v29 }
  0x8c   : > { %375 = vst.msk [vmem:[#allocation2 + $0xf] sm:$0xff] %vm373_vm5, %v352_v31  ;;  %374 = vst.msk [vmem:[#allocation2 + $0x7] sm:$0xff] %vm373_vm5, %v350_v32 }
  0x8f   : > { %v323_v33 = vpop.permute.xlu1 %322  ;;  %v321_v34 = vpop.permute.xlu0 %320 }
  0x90   : > { %343 = vst.msk [vmem:[#allocation2 + $0x20] sm:$0xff] %vm338_vm3, %v323_v33  ;;  %342 = vst.msk [vmem:[#allocation2 + $0x18] sm:$0xff] %vm338_vm3, %v321_v34 }
  0x93   : > { %v356_v35 = vpop.permute.xlu1 %355  ;;  %v354_v36 = vpop.permute.xlu0 %353  ;;  %v381_v37 = vld [vmem:[#allocation2] sm:$0xff]  ;;  %v382_v38 = vld [vmem:[#allocation2 + $0x8] sm:$0xff] }
  0x94   : > { %377 = vst.msk [vmem:[#allocation2 + $0x1f] sm:$0xff] %vm373_vm5, %v356_v35  ;;  %376 = vst.msk [vmem:[#allocation2 + $0x17] sm:$0xff] %vm373_vm5, %v354_v36  ;;  %1011 = vmatprep.mubr.msk.f32.mxu0 %vm287_vm0, %v381_v37 }
  0x95   : > { %1012 = vmatmul.mubr.msk.f32.vlgmr.msra.gmra.mrb[0].mxu0 %vm287_vm0, %v382_v38 }
  0x97   : > { %v327_v39 = vpop.permute.xlu1 %326  ;;  %v325_v40 = vpop.permute.xlu0 %324 }
  0x98   : > { %345 = vst.msk [vmem:[#allocation2 + $0x30] sm:$0xff] %vm338_vm3, %v327_v39  ;;  %344 = vst.msk [vmem:[#allocation2 + $0x28] sm:$0xff] %vm338_vm3, %v325_v40 }
  0x9b   : > { %v360_v41 = vpop.permute.xlu1 %359  ;;  %v358_v42 = vpop.permute.xlu0 %357  ;;  %v383_v43 = vld [vmem:[#allocation2 + $0x10] sm:$0xff]  ;;  %v384_v44 = vld [vmem:[#allocation2 + $0x18] sm:$0xff] }
  0x9c   : > { %379 = vst.msk [vmem:[#allocation2 + $0x2f] sm:$0xff] %vm373_vm5, %v360_v41  ;;  %378 = vst.msk [vmem:[#allocation2 + $0x27] sm:$0xff] %vm373_vm5, %v358_v42  ;;  %1014 = vmatprep.mubr.msk.f32.mxu0 %vm287_vm0, %v383_v43 }
  0x9d   : > { %1015 = vmatmul.mubr.msk.f32.gmra.mrb[2].mxu0 %vm287_vm0, %v384_v44 }
  0x9f   : > { %v329_v45 = vpop.permute.xlu0 %328  ;;  %v362_v46 = vpop.permute.xlu1 %361 }
  0xa0   : > { %346 = vst.msk [vmem:[#allocation2 + $0x38] sm:$0xff] %vm338_vm3, %v329_v45 }
  0xa1   : > { %380 = vst.msk [vmem:[#allocation2 + $0x37] sm:$0xff] %vm373_vm5, %v362_v46 }
  0xa3   : > { %v385_v47 = vld [vmem:[#allocation2 + $0x20] sm:$0xff]  ;;  %v386_v48 = vld [vmem:[#allocation2 + $0x28] sm:$0xff] }
  0xa4   : > { %1017 = vmatprep.mubr.msk.f32.mxu0 %vm287_vm0, %v385_v47 }
  0xa5   : > { %1018 = vmatmul.mubr.msk.f32.gmra.mrb[4].mxu0 %vm287_vm0, %v386_v48 }
  0xa8   : > { %v387_v49 = vld [vmem:[#allocation2 + $0x30] sm:$0xff]  ;;  %v388_v50 = vld [vmem:[#allocation2 + $0x38] sm:$0xff] }
  0xa9   : > { %1020 = vmatprep.mubr.msk.f32.mxu0 %vm287_vm0, %v387_v49 }
  0xaa   : > { %1021 = vmatmul.mubr.msk.f32.gmra.mrb[6].mxu0 %vm287_vm0, %v388_v50 }
 0x168   : > { %v1013_v58 = vpop.f32.mrb[0].mxu0 }
 0x169   : > { %v538_v62 = vmul.f32 %v1013_v58, %v1350_v57  ;;  %v491_v63 = vpop.f32.mrb[1].mxu0 }
 0x16a   : > { %v537_v1 = vmul.f32 %v1350_v57, %v491_v63 }
 0x16b   : > { %v553_v2 = vadd.f32 %v1355_v59, %v538_v62 }
 0x16c   : > { %v552_v3 = vadd.f32 %v1355_v59, %v537_v1 }
 0x16d   : > { %v561_v6 = vmax.f32 %v553_v2, 0.0 }
 0x16e   : > { %v560_v8 = vmax.f32 %v552_v3, 0.0 }
 0x16f   : > { %577 = vst.msk [vmem:[#allocation3 + $0x9] sm:$0xff] %vm296_vm1, %v561_v6  ;;  %626 = vrot.lane.b32.xlu0 %v561_v6, %s1128_s30  ;;  %594 = vrot.lane.b32.xlu1 %v561_v6, %s1127_s23 }
 0x170   : > { %576 = vst.msk [vmem:[#allocation3 + $0x1] sm:$0xff] %vm296_vm1, %v560_v8  ;;  %v1016_v9 = vpop.f32.mrb[2].mxu0 }
 0x171   : > { %v540_v19 = vmul.f32 %v1016_v9, %v1350_v57  ;;  %v501_v20 = vpop.f32.mrb[3].mxu0  ;;  %v942_v9 = vld [vmem:[%s1491_s6] ss:$0 sm:$0xff] }
 0x172   : > { %v539_v22 = vmul.f32 %v1350_v57, %v501_v20 }
 0x173   : > { %v555_v23 = vadd.f32 %v1355_v59, %v540_v19  ;;  %624 = vrot.lane.b32.xlu1 %v560_v8, %s1128_s30  ;;  %592 = vrot.lane.b32.xlu0 %v560_v8, %s1127_s23 }
 0x174   : > { %v554_v24 = vadd.f32 %v1355_v59, %v539_v22 }
 0x175   : > { %v563_v28 = vmax.f32 %v555_v23, 0.0 }
 0x176   : > { %v562_v30 = vmax.f32 %v554_v24, 0.0 }
 0x177   : > { %579 = vst.msk [vmem:[#allocation3 + $0x19] sm:$0xff] %vm296_vm1, %v563_v28  ;;  %598 = vrot.lane.b32.xlu0 %v563_v28, %s1127_s23 }
 0x178   : > { %578 = vst.msk [vmem:[#allocation3 + $0x11] sm:$0xff] %vm296_vm1, %v562_v30  ;;  %628 = vrot.lane.b32.xlu1 %v562_v30, %s1128_s30  ;;  %v1019_v31 = vpop.f32.mrb[4].mxu0 }
 0x179   : > { %v542_v32 = vmul.f32 %v1019_v31, %v1350_v57  ;;  %v511_v33 = vpop.f32.mrb[5].mxu0 }
 0x17a   : > { %v541_v34 = vmul.f32 %v1350_v57, %v511_v33 }
 0x17b   : > { %v557_v35 = vadd.f32 %v1355_v59, %v542_v32  ;;  %630 = vrot.lane.b32.xlu0 %v563_v28, %s1128_s30 }
 0x17c   : > { %v556_v36 = vadd.f32 %v1355_v59, %v541_v34 }
 0x17d   : > { %v565_v37 = vmax.f32 %v557_v35, 0.0  ;;  %v1022_v38 = vpop.f32.mrb[6].mxu0 }
 0x17e   : > { %v564_v39 = vmax.f32 %v556_v36, 0.0  ;;  %v544_v40 = vmul.f32 %v1022_v38, %v1350_v57  ;;  %v521_v41 = vpop.f32.mrb[7].mxu0 }
 0x17f   : > { %581 = vst.msk [vmem:[#allocation3 + $0x29] sm:$0xff] %vm296_vm1, %v565_v37  ;;  %v543_v42 = vmul.f32 %v1350_v57, %v521_v41  ;;  %596 = vrot.lane.b32.xlu0 %v562_v30, %s1127_s23 }
 0x180   : > { %580 = vst.msk [vmem:[#allocation3 + $0x21] sm:$0xff] %vm296_vm1, %v564_v39  ;;  %v559_v43 = vadd.f32 %v1355_v59, %v544_v40  ;;  %600 = vrot.lane.b32.xlu1 %v564_v39, %s1127_s23 }
 0x181   : > { %v558_v44 = vadd.f32 %v1355_v59, %v543_v42 }
 0x182   : > { %v567_v45 = vmax.f32 %v559_v43, 0.0 }
 0x183   : > { %v566_v46 = vmax.f32 %v558_v44, 0.0  ;;  %602 = vrot.lane.b32.xlu0 %v565_v37, %s1127_s23 }
 0x184   : > { %583 = vst.msk [vmem:[#allocation3 + $0x39] sm:$0x7f] %vm304_vm2, %v567_v45  ;;  %632 = vrot.lane.b32.xlu1 %v564_v39, %s1128_s30 }
 0x185   : > { %582 = vst.msk [vmem:[#allocation3 + $0x31] sm:$0xff] %vm296_vm1, %v566_v46 }
 0x187   : > { %634 = vrot.lane.b32.xlu0 %v565_v37, %s1128_s30 }
 0x188   : > { %604 = vrot.lane.b32.xlu1 %v566_v46, %s1127_s23 }
 0x18b   : > { %606 = vrot.lane.b32.xlu0 %v567_v45, %s1127_s23 }
 0x18c   : > { %636 = vrot.lane.b32.xlu1 %v566_v46, %s1128_s30 }
 0x190   : > { %638 = vrot.lane.b32.xlu1 %v567_v45, %s1128_s30 }
 0x1e1   : > { %v627_v47 = vpop.permute.xlu0 %626  ;;  %v595_v48 = vpop.permute.xlu1 %594 }
 0x1e2   : > { %617 = vst.msk [vmem:[#allocation3 + $0x8] sm:$0xff] %vm338_vm3, %v595_v48 }
 0x1e5   : > { %v625_v49 = vpop.permute.xlu1 %624  ;;  %v593_v50 = vpop.permute.xlu0 %592 }
 0x1e6   : > { %616 = vst.msk [vmem:[#allocation3] sm:$0xff] %vm338_vm3, %v593_v50 }
 0x1e7   : > { %648 = vst.msk [vmem:[#allocation3 - $0x1] sm:$0xfe] %vm371_vm4, %v625_v49 }
 0x1e8   : > { %649 = vst.msk [vmem:[#allocation3 + $0x7] sm:$0xff] %vm373_vm5, %v627_v47 }
 0x1e9   : > { %v599_v51 = vpop.permute.xlu0 %598 }
 0x1ea   : > { %619 = vst.msk [vmem:[#allocation3 + $0x18] sm:$0xff] %vm338_vm3, %v599_v51  ;;  %v629_v53 = vpop.permute.xlu1 %628 }
 0x1ed   : > { %v631_v52 = vpop.permute.xlu0 %630 }
 0x1ef   : > { %v656_v54 = vld [vmem:[#allocation3] sm:$0xff] }
 0x1f0   : > { %1047 = vmatprep.mubr.msk.f32.mxu1 %vm287_vm0, %v656_v54 }
 0x1f1   : > { %v597_v55 = vpop.permute.xlu0 %596 }
 0x1f2   : > { %618 = vst.msk [vmem:[#allocation3 + $0x10] sm:$0xff] %vm338_vm3, %v597_v55  ;;  %v601_v56 = vpop.permute.xlu1 %600 }
 0x1f3   : > { %650 = vst.msk [vmem:[#allocation3 + $0xf] sm:$0xff] %vm373_vm5, %v629_v53  ;;  %651 = vst.msk [vmem:[#allocation3 + $0x17] sm:$0xff] %vm373_vm5, %v631_v52 }
 0x1f4   : > { %620 = vst.msk [vmem:[#allocation3 + $0x20] sm:$0xff] %vm338_vm3, %v601_v56 }
 0x1f5   : > { %v603_v57 = vpop.permute.xlu0 %602 }
 0x1f6   : > { %621 = vst.msk [vmem:[#allocation3 + $0x28] sm:$0xff] %vm338_vm3, %v603_v57  ;;  %v633_v58 = vpop.permute.xlu1 %632 }
 0x1f7   : > { %652 = vst.msk [vmem:[#allocation3 + $0x1f] sm:$0xff] %vm373_vm5, %v633_v58 }
 0x1f9   : > { %v635_v59 = vpop.permute.xlu0 %634 }
 0x1fa   : > { %653 = vst.msk [vmem:[#allocation3 + $0x27] sm:$0xff] %vm373_vm5, %v635_v59  ;;  %v605_v60 = vpop.permute.xlu1 %604  ;;  %v657_v61 = vld [vmem:[#allocation3 + $0x8] sm:$0xff]  ;;  %v658_v62 = vld [vmem:[#allocation3 + $0x10] sm:$0xff] }
 0x1fb   : > { %622 = vst.msk [vmem:[#allocation3 + $0x30] sm:$0xff] %vm338_vm3, %v605_v60  ;;  %1048 = vmatmul.mubr.msk.f32.vlgmr.msra.gmra.mrb[0].mxu1 %vm287_vm0, %v657_v61 }
 0x1fc   : > { %1050 = vmatprep.mubr.msk.f32.mxu1 %vm287_vm0, %v658_v62 }
 0x1fd   : > { %v607_v63 = vpop.permute.xlu0 %606 }
 0x1fe   : > { %623 = vst.msk [vmem:[#allocation3 + $0x38] sm:$0xff] %vm338_vm3, %v607_v63  ;;  %v637_v0 = vpop.permute.xlu1 %636  ;;  %v659_v1 = vld [vmem:[#allocation3 + $0x18] sm:$0xff] }
 0x1ff   : > { %654 = vst.msk [vmem:[#allocation3 + $0x2f] sm:$0xff] %vm373_vm5, %v637_v0  ;;  %1051 = vmatmul.mubr.msk.f32.gmra.mrb[2].mxu1 %vm287_vm0, %v659_v1 }
 0x201   : > { %v660_v2 = vld [vmem:[#allocation3 + $0x20] sm:$0xff] }
 0x202   : > { %1053 = vmatprep.mubr.msk.f32.mxu1 %vm287_vm0, %v660_v2  ;;  %v639_v3 = vpop.permute.xlu1 %638 }
 0x203   : > { %655 = vst.msk [vmem:[#allocation3 + $0x37] sm:$0xff] %vm373_vm5, %v639_v3 }
 0x206   : > { %v661_v4 = vld [vmem:[#allocation3 + $0x28] sm:$0xff] }
 0x207   : > { %1054 = vmatmul.mubr.msk.f32.gmra.mrb[4].mxu1 %vm287_vm0, %v661_v4 }
 0x20a   : > { %v662_v5 = vld [vmem:[#allocation3 + $0x30] sm:$0xff]  ;;  %v663_v6 = vld [vmem:[#allocation3 + $0x38] sm:$0xff] }
 0x20b   : > { %1056 = vmatprep.mubr.msk.f32.mxu1 %vm287_vm0, %v662_v5 }
 0x20c   : > { %1057 = vmatmul.mubr.msk.f32.gmra.mrb[6].mxu1 %vm287_vm0, %v663_v6 }
 0x2ce   : > { %v1049_v8 = vpop.f32.mrb[0].mxu1 }
 0x2cf   : > { %v813_v10 = vmul.f32 %v1049_v8, %v941_v7  ;;  %v766_v11 = vpop.f32.mrb[1].mxu1 }
 0x2d0   : > { %v812_v19 = vmul.f32 %v941_v7, %v766_v11 }
 0x2d1   : > { %v828_v20 = vadd.f32 %v942_v9, %v813_v10 }
 0x2d2   : > { %v827_v21 = vadd.f32 %v942_v9, %v812_v19  ;;  %v1052_v22 = vpop.f32.mrb[2].mxu1 }
 0x2d3   : > { %v836_v23 = vadd.f32 %v828_v20, %v1234_v14  ;;  %v815_v24 = vmul.f32 %v1052_v22, %v941_v7  ;;  %v776_v25 = vpop.f32.mrb[3].mxu1 }
 0x2d4   : > { %v835_v27 = vadd.f32 %v827_v21, %v1231_v13  ;;  %v814_v28 = vmul.f32 %v941_v7, %v776_v25 }
 0x2d5   : > { %v844_v29 = vmax.f32 %v836_v23, 0.0  ;;  %v830_v30 = vadd.f32 %v942_v9, %v815_v24 }
 0x2d6   : > { %v843_v31 = vmax.f32 %v835_v27, 0.0  ;;  %v829_v32 = vadd.f32 %v942_v9, %v814_v28 }
 0x2d7   : > { %852 = vst.msk [vmem:[%s1457_s8 + $0x8] sm:$0xff] %vm296_vm1, %v844_v29  ;;  %v838_v14 = vadd.f32 %v830_v30, %v1244_v16 }
 0x2d8   : > { %851 = vst.msk [vmem:[%s1457_s8] sm:$0xff] %vm296_vm1, %v843_v31  ;;  %v837_v33 = vadd.f32 %v829_v32, %v1228_v12 }
 0x2d9   : > { %v846_v34 = vmax.f32 %v838_v14, 0.0 }
 0x2da   : > { %v845_v35 = vmax.f32 %v837_v33, 0.0  ;;  %v1055_v36 = vpop.f32.mrb[4].mxu1 }
 0x2db   : > { %854 = vst.msk [vmem:[%s1457_s8 + $0x18] sm:$0xff] %vm296_vm1, %v846_v34  ;;  %v817_v13 = vmul.f32 %v1055_v36, %v941_v7  ;;  %v786_v37 = vpop.f32.mrb[5].mxu1 }
 0x2dc   : > { %853 = vst.msk [vmem:[%s1457_s8 + $0x10] sm:$0xff] %vm296_vm1, %v845_v35  ;;  %v816_v38 = vmul.f32 %v941_v7, %v786_v37 }
 0x2dd   : > { %v832_v39 = vadd.f32 %v942_v9, %v817_v13 }
 0x2de   : > { %v831_v40 = vadd.f32 %v942_v9, %v816_v38 }
 0x2df   : > { %v840_v16 = vadd.f32 %v832_v39, %v1256_v18  ;;  %v1058_v41 = vpop.f32.mrb[6].mxu1 }
 0x2e0   : > { %v839_v12 = vadd.f32 %v831_v40, %v1241_v15  ;;  %v819_v42 = vmul.f32 %v1058_v41, %v941_v7  ;;  %v796_v43 = vpop.f32.mrb[7].mxu1 }
 0x2e1   : > { %v848_v44 = vmax.f32 %v840_v16, 0.0  ;;  %v818_v45 = vmul.f32 %v941_v7, %v796_v43 }
 0x2e2   : > { %v847_v46 = vmax.f32 %v839_v12, 0.0  ;;  %v834_v47 = vadd.f32 %v942_v9, %v819_v42 }
 0x2e3   : > { %856 = vst.msk [vmem:[%s1457_s8 + $0x28] sm:$0xff] %vm296_vm1, %v848_v44  ;;  %v833_v48 = vadd.f32 %v942_v9, %v818_v45 }
 0x2e4   : > { %855 = vst.msk [vmem:[%s1457_s8 + $0x20] sm:$0xff] %vm296_vm1, %v847_v46  ;;  %v842_v49 = vadd.f32 %v834_v47, %v1291_v26 }
 0x2e5   : > { %v841_v18 = vadd.f32 %v833_v48, %v1253_v17 }
 0x2e6   : > { %v850_v50 = vmax.f32 %v842_v49, 0.0 }
 0x2e7   : > { %v849_v51 = vmax.f32 %v841_v18, 0.0 }
 0x2e8   : > { %858 = vst.msk [vmem:[%s1457_s8 + $0x38] sm:$0xff] %vm296_vm1, %v850_v50 }
 0x2e9   : > { %857 = vst.msk [vmem:[%s1457_s8 + $0x30] sm:$0xff] %vm296_vm1, %v849_v51 }
 0x2ea PF: > { %s17_s24 = sadd.s32 1, %s1124_s24  }
 0x2eb   : > { %p14_p4 = scmp.ge.s32.totalorder %s17_s24, 4  }
 0x2ed   :  { %16 = sbr.rel (!%p14_p4) target bundleno = 1 (0x1), region = 78 }

// kernel: fwd.3
= control target key start
LH: loop header
LB: loop body
LE: loop exit
PB: predicated region body
PF: predicated region fallthrough
CT: control target
= control target key end

     0   :  { %s1428_s30 = smov 0   ;;  %s1795_s0 = inlined_call_operand.vmem [shape: f32[2,64,32], index: 0, kind: input, shape index: {}]   ;;  %s1796_s1 = inlined_call_operand.vmem [shape: f32[96,64], index: 1, kind: input, shape index: {}]   ;;  %s1797_s2 = inlined_call_operand.vmem [shape: f32[1,64], index: 2, kind: input, shape index: {}]   ;;  %s1798_s3 = inlined_call_operand.vmem [shape: f32[1,64], index: 3, kind: input, shape index: {}]   ;;  %s1799_s4 = inlined_call_operand.vmem [shape: f32[192,64], index: 4, kind: input, shape index: {}]   ;;  %s1800_s5 = inlined_call_operand.vmem [shape: f32[1,64], index: 5, kind: input, shape index: {}]   ;;  %s1801_s6 = inlined_call_operand.vmem [shape: f32[1,64], index: 6, kind: input, shape index: {}]   ;;  %s1802_s7 = inlined_call_operand.vmem [shape: f32[32,64], index: 7, kind: input, shape index: {}]   ;;  %s1803_s8 = inlined_call_operand.vmem [shape: f32[1,64], index: 8, kind: input, shape index: {}]   ;;  %s1804_s9 = inlined_call_operand.vmem [shape: f32[2,64,64], index: 9, kind: output, shape index: {}]  }
   0x1 LB: > { %s1156_s10 = sadd.s32 4294967295, %s1372_s30   ;;  %p1160_p0 = scmp.ge.s32.totalorder %s1372_s30, 1  ;;  %s1372_s30 = sphi %s1428_s30, %s19_s30  }
   0x2   : > { %p287_p1 = scmp.lt.s32.totalorder %s1372_s30, 3 }
   0x4   : > { %p288_p2 = pnand %p1160_p0, %p287_p1 }
   0x5   : > { %p323_p3 = scmp.lt.s32.totalorder (!%p288_p2), %s1156_s10, 1  ;;  %v341_v0 = vld [vmem:[%s1802_s7] sm:$0xff] (!%p288_p2)  ;;  %v342_v1 = vld [vmem:[%s1802_s7 + $0x8] sm:$0xff] (!%p288_p2)  ;;  %v343_v2 = vld [vmem:[%s1802_s7 + $0x10] sm:$0xff] (!%p288_p2)  ;;  %vm482_vm0 = vcmask (!%p288_p2), 785408   ;;  %v1374_v8 = vmov (!%p288_p2), 0.0  }
   0x6   : > { %291 = sbr.rel (%p288_p2) target bundleno = 740 (0x2e4), region = 56  ;;  %v1286_v3 = vpack.c.bf16 (!%p288_p2), %v342_v1, %v341_v0  ;;  %v344_v4 = vld [vmem:[%s1802_s7 + $0x18] sm:$0xff] (!%p288_p2)  ;;  %v575_v6 = vld [vmem:[%s1796_s1] sm:$0xff] (!%p288_p2)  ;;  %v576_v7 = vld [vmem:[%s1796_s1 + $0x8] sm:$0xff] (!%p288_p2)  ;;  %484 = vst.msk [vmem:[#allocation2 + $0x8] sm:$0xff] (!%p288_p2), %vm482_vm0, %v1374_v8  ;;  %vm352_vm1 = vcmask (!%p288_p2), 261120  }
   0x7   : > { %v1290_v5 = vpack.c.bf16 (!%p288_p2), %v344_v4, %v343_v2  ;;  %485 = vst.msk [vmem:[#allocation2 + $0x10] sm:$0xff] (!%p288_p2), %vm482_vm0, %v1374_v8  ;;  %486 = vst.msk [vmem:[#allocation2 + $0x18] sm:$0xff] (!%p288_p2), %vm482_vm0, %v1374_v8  ;;  %v1294_v9 = vpack.c.bf16 (!%p288_p2), %v576_v7, %v575_v6  ;;  %v577_v10 = vld [vmem:[%s1796_s1 + $0x10] sm:$0xff] (!%p288_p2)  ;;  %v578_v11 = vld [vmem:[%s1796_s1 + $0x18] sm:$0xff] (!%p288_p2)  ;;  %s1375_s12 = smov (!%p288_p2), 32   ;;  %s1376_s13 = smov (!%p288_p2), 64  }
   0x8   : > { %483 = vst.msk [vmem:[#allocation2] sm:$0xff] (!%p288_p2), %vm482_vm0, %v1374_v8  ;;  %487 = vst.msk [vmem:[#allocation2 + $0x20] sm:$0xff] (!%p288_p2), %vm482_vm0, %v1374_v8  ;;  %1287 = vmatprep.subr.bf16.mxu1 (!%p288_p2), %v1286_v3  ;;  %v1298_v19 = vpack.c.bf16 (!%p288_p2), %v578_v11, %v577_v10  ;;  %v579_v20 = vld [vmem:[%s1796_s1 + $0x20] sm:$0xff] (!%p288_p2)  ;;  %v580_v21 = vld [vmem:[%s1796_s1 + $0x28] sm:$0xff] (!%p288_p2)  ;;  %vm498_vm2 = vcmask (!%p288_p2), 260096   ;;  %vm524_vm3 = vcmask (!%p288_p2), 523520  }
   0x9   : > { %488 = vst.msk [vmem:[#allocation2 + $0x28] sm:$0xff] (!%p288_p2), %vm482_vm0, %v1374_v8  ;;  %489 = vst.msk [vmem:[#allocation2 + $0x30] sm:$0xff] (!%p288_p2), %vm482_vm0, %v1374_v8  ;;  %1289 = vmatpush3.bf16.msra.mxu1 (!%p288_p2), %v1286_v3  ;;  %v1302_v22 = vpack.c.bf16 (!%p288_p2), %v580_v21, %v579_v20  ;;  %v581_v23 = vld [vmem:[%s1796_s1 + $0x30] sm:$0xff] (!%p288_p2)  ;;  %v582_v24 = vld [vmem:[%s1796_s1 + $0x38] sm:$0xff] (!%p288_p2)  ;;  %vm557_vm4 = vcmask (!%p288_p2), 785921   ;;  %vm559_vm5 = vcmask (!%p288_p2), 785920  }
   0xa   : > { %490 = vst.msk [vmem:[#allocation2 + $0x38] sm:$0xff] (!%p288_p2), %vm482_vm0, %v1374_v8  ;;  %754 = vst [vmem:[#allocation3] sm:$0xff] (!%p288_p2), %v1374_v8  ;;  %1291 = vmatprep.subr.bf16.mxu1 (!%p288_p2), %v1290_v5  ;;  %v1306_v25 = vpack.c.bf16 (!%p288_p2), %v582_v24, %v581_v23  ;;  %v583_v26 = vld [vmem:[%s1796_s1 + $0x40] sm:$0xff] (!%p288_p2)  ;;  %v584_v28 = vld [vmem:[%s1796_s1 + $0x48] sm:$0xff] (!%p288_p2)  ;;  %vm755_vm6 = vcmask (!%p288_p2), 523264   ;;  %v1377_v4 = vmov (!%p288_p2), 0.0|0.0  }
   0xb   : > { %757 = vst [vmem:[#allocation3 + $0x10] sm:$0xff] (!%p288_p2), %v1374_v8  ;;  %759 = vst [vmem:[#allocation3 + $0x20] sm:$0xff] (!%p288_p2), %v1374_v8  ;;  %v1310_v29 = vpack.c.bf16 (!%p288_p2), %v584_v28, %v583_v26  ;;  %v585_v30 = vld [vmem:[%s1796_s1 + $0x50] sm:$0xff] (!%p288_p2)  ;;  %v586_v31 = vld [vmem:[%s1796_s1 + $0x58] sm:$0xff] (!%p288_p2)  ;;  %1318 = vmatprep.subr.bf16.mxu0 (!%p288_p2), %v1377_v4  ;;  %vm845_vm7 = vcmask (!%p288_p2), 1046528   ;;  %vm779_vm8 = vcmask (!%p288_p2), 1040384  }
   0xc   : > { %761 = vst [vmem:[#allocation3 + $0x30] sm:$0xff] (!%p288_p2), %v1374_v8  ;;  %763 = vst [vmem:[#allocation3 + $0x40] sm:$0xff] (!%p288_p2), %v1374_v8  ;;  %v1314_v32 = vpack.c.bf16 (!%p288_p2), %v586_v31, %v585_v30  ;;  %v894_v1 = vld [vmem:[%s1799_s4] sm:$0xff] (!%p288_p2)  ;;  %v895_v2 = vld [vmem:[%s1799_s4 + $0x8] sm:$0xff] (!%p288_p2)  ;;  %vm803_vm9 = vcmask (!%p288_p2), 523265   ;;  %vm876_vm10 = vcmask (!%p288_p2), 522240  }
   0xd   : > { %s1806_s10 = smov (!%p323_p3, %s1156_s10), 1  ;;  %765 = vst [vmem:[#allocation3 + $0x50] sm:$0xff] %v1374_v8  ;;  %767 = vst [vmem:[#allocation3 + $0x60] sm:$0xff] %v1374_v8  ;;  %1293 = vmatpush3.bf16.msra.mxu1 %v1290_v5  ;;  %v896_v3 = vld [vmem:[%s1799_s4 + $0x10] sm:$0xff]  ;;  %v1319_v5 = vpack.c.bf16 %v895_v2, %v894_v1  ;;  %v897_v6 = vld [vmem:[%s1799_s4 + $0x18] sm:$0xff]  ;;  %vm836_vm11 = vcmask 1048064  }
   0xe   : > { %769 = vst [vmem:[#allocation3 + $0x70] sm:$0xff] %v1374_v8  ;;  %s1196_s23 = sshll.u32 %s1806_s10, 6  ;;  %1295 = vmatprep.subr.bf16.mxu1 %v1294_v9  ;;  %756 = vst.msk [vmem:[#allocation3 + $0x8] sm:$0xff] %vm755_vm6, %v1374_v8  ;;  %v1322_v7 = vpack.c.bf16 %v897_v6, %v896_v3  ;;  %v900_v11 = vld [vmem:[%s1799_s4 + $0x30] sm:$0xff]  ;;  %v906_v20 = vld [vmem:[%s1799_s4 + $0x60] sm:$0xff] }
   0xf   : > { %s1486_s26 = scalar_lea.vmem %s1795_s0, %s1196_s23  ;;  %758 = vst.msk [vmem:[#allocation3 + $0x18] sm:$0xff] %vm755_vm6, %v1374_v8  ;;  %760 = vst.msk [vmem:[#allocation3 + $0x28] sm:$0xff] %vm755_vm6, %v1374_v8  ;;  %1320 = vmatpush1.bf16.msra.mxu0 %v1319_v5  ;;  %v907_v21 = vld [vmem:[%s1799_s4 + $0x68] sm:$0xff]  ;;  %v908_v23 = vld [vmem:[%s1799_s4 + $0x70] sm:$0xff]  ;;  %s1767_s21 = scalar_lea.vmem %s1804_s9, %s1196_s23 }
  0x10   : > { %v335_v12 = vld [vmem:[%s1486_s26 + $0x10] sm:$0xff]  ;;  %v333_v13 = vld [vmem:[%s1486_s26] sm:$0xff]  ;;  %v334_v14 = vld [vmem:[%s1486_s26 + $0x8] sm:$0xff]  ;;  %762 = vst.msk [vmem:[#allocation3 + $0x38] sm:$0xff] %vm755_vm6, %v1374_v8  ;;  %1321 = vmatprep.subr.bf16.mxu0 %v1377_v4 }
  0x11   : > { %504 = vrot.lane.b32.xlu1 %v335_v12, %s1375_s12  ;;  %500 = vrot.lane.b32.xlu0 %v333_v13, %s1375_s12  ;;  %v337_v15 = vld [vmem:[%s1486_s26 + $0x20] sm:$0xff]  ;;  %v336_v16 = vld [vmem:[%s1486_s26 + $0x18] sm:$0xff]  ;;  %492 = vst.msk [vmem:[#allocation2 + $0x9] sm:$0xff] %vm352_vm1, %v334_v14  ;;  %493 = vst.msk [vmem:[#allocation2 + $0x11] sm:$0xff] %vm352_vm1, %v335_v12 }
  0x12   : > { %491 = vst.msk [vmem:[#allocation2 + $0x1] sm:$0xff] %vm352_vm1, %v333_v13  ;;  %v339_v17 = vld [vmem:[%s1486_s26 + $0x30] sm:$0xff]  ;;  %v338_v18 = vld [vmem:[%s1486_s26 + $0x28] sm:$0xff]  ;;  %1238 = vmatprep.mubr.msk.f32.mxu1 %vm352_vm1, %v333_v13  ;;  %494 = vst.msk [vmem:[#allocation2 + $0x19] sm:$0xff] %vm352_vm1, %v336_v16 }
  0x13   : > { %495 = vst.msk [vmem:[#allocation2 + $0x21] sm:$0xff] %vm352_vm1, %v337_v15  ;;  %496 = vst.msk [vmem:[#allocation2 + $0x29] sm:$0xff] %vm352_vm1, %v338_v18  ;;  %1239 = vmatmul.mubr.msk.f32.vlgmr.msra.gmra.mrb[0].mxu1 %vm352_vm1, %v334_v14  ;;  %v340_v27 = vld [vmem:[%s1486_s26 + $0x38] sm:$0xff]  ;;  %1323 = vmatpush1.bf16.msra.mxu0 %v1322_v7  ;;  %v910_v26 = vld [vmem:[%s1799_s4 + $0x80] sm:$0xff] }
  0x14   : > { %497 = vst.msk [vmem:[#allocation2 + $0x31] sm:$0xff] %vm352_vm1, %v339_v17  ;;  %1297 = vmatpush3.bf16.msra.mxu1 %v1294_v9  ;;  %1241 = vmatprep.mubr.msk.f32.mxu1 %vm352_vm1, %v335_v12  ;;  %v899_v9 = vld [vmem:[%s1799_s4 + $0x28] sm:$0xff]  ;;  %v909_v24 = vld [vmem:[%s1799_s4 + $0x78] sm:$0xff] }
  0x15   : > { %533 = vrot.lane.b32.xlu1 %v333_v13, %s1376_s13  ;;  %502 = vrot.lane.b32.xlu0 %v334_v14, %s1375_s12  ;;  %499 = vst.msk [vmem:[#allocation2 + $0x39] sm:$0x7f] %vm498_vm2, %v340_v27  ;;  %v913_v30 = vld [vmem:[%s1799_s4 + $0x98] sm:$0xff] }
  0x16   : > { %1299 = vmatprep.subr.bf16.mxu1 %v1298_v19  ;;  %764 = vst.msk [vmem:[#allocation3 + $0x48] sm:$0xff] %vm755_vm6, %v1374_v8  ;;  %766 = vst.msk [vmem:[#allocation3 + $0x58] sm:$0xff] %vm755_vm6, %v1374_v8  ;;  %1324 = vmatprep.subr.bf16.mxu0 %v1377_v4 }
  0x17   : > { %1242 = vmatmul.mubr.msk.f32.gmra.mrb[2].mxu1 %vm352_vm1, %v336_v16  ;;  %768 = vst.msk [vmem:[#allocation3 + $0x68] sm:$0xff] %vm755_vm6, %v1374_v8  ;;  %770 = vst.msk [vmem:[#allocation3 + $0x78] sm:$0xff] %vm755_vm6, %v1374_v8  ;;  %v898_v8 = vld [vmem:[%s1799_s4 + $0x20] sm:$0xff] }
  0x18   : > { %1301 = vmatpush3.bf16.msra.mxu1 %v1298_v19  ;;  %1244 = vmatprep.mubr.msk.f32.mxu1 %vm352_vm1, %v337_v15  ;;  %v1325_v10 = vpack.c.bf16 %v899_v9, %v898_v8 }
  0x19   : > { %537 = vrot.lane.b32.xlu1 %v335_v12, %s1376_s13  ;;  %535 = vrot.lane.b32.xlu0 %v334_v14, %s1376_s13  ;;  %v901_v12 = vld [vmem:[%s1799_s4 + $0x38] sm:$0xff]  ;;  %v902_v14 = vld [vmem:[%s1799_s4 + $0x40] sm:$0xff] }
  0x1a   : > { %1303 = vmatprep.subr.bf16.mxu1 %v1302_v22  ;;  %1326 = vmatpush1.bf16.msra.mxu0 %v1325_v10  ;;  %v1328_v13 = vpack.c.bf16 %v901_v12, %v900_v11 }
  0x1b   : > { %1245 = vmatmul.mubr.msk.f32.gmra.mrb[4].mxu1 %vm352_vm1, %v338_v18  ;;  %1327 = vmatprep.subr.bf16.mxu0 %v1377_v4 }
  0x1c   : > { %1305 = vmatpush3.bf16.msra.mxu1 %v1302_v22  ;;  %1247 = vmatprep.mubr.msk.f32.mxu1 %vm352_vm1, %v339_v17  ;;  %v1337_v22 = vpack.c.bf16 %v907_v21, %v906_v20 }
  0x1d   : > { %508 = vrot.lane.b32.xlu1 %v337_v15, %s1375_s12  ;;  %506 = vrot.lane.b32.xlu0 %v336_v16, %s1375_s12 }
  0x1e   : > { %1307 = vmatprep.subr.bf16.mxu1 %v1306_v25  ;;  %1329 = vmatpush1.bf16.msra.mxu0 %v1328_v13 }
  0x1f   : > { %1248 = vmatmul.mubr.msk.f32.gmra.mrb[6].mxu1 %vm352_vm1, %v340_v27  ;;  %1330 = vmatprep.subr.bf16.mxu0 %v1377_v4 }
  0x20   : > { %1309 = vmatpush3.bf16.msra.mxu1 %v1306_v25  ;;  %v1340_v25 = vpack.c.bf16 %v909_v24, %v908_v23 }
  0x21   : > { %541 = vrot.lane.b32.xlu1 %v337_v15, %s1376_s13  ;;  %539 = vrot.lane.b32.xlu0 %v336_v16, %s1376_s13  ;;  %v903_v15 = vld [vmem:[%s1799_s4 + $0x48] sm:$0xff] }
  0x22   : > { %1311 = vmatprep.subr.bf16.mxu1 %v1310_v29  ;;  %v1331_v16 = vpack.c.bf16 %v903_v15, %v902_v14 }
  0x24   : > { %1313 = vmatpush3.bf16.msra.mxu1 %v1310_v29  ;;  %1332 = vmatpush1.bf16.msra.mxu0 %v1331_v16  ;;  %v912_v29 = vld [vmem:[%s1799_s4 + $0x90] sm:$0xff] }
  0x25   : > { %512 = vrot.lane.b32.xlu1 %v339_v17, %s1375_s12  ;;  %510 = vrot.lane.b32.xlu0 %v338_v18, %s1375_s12  ;;  %v1346_v31 = vpack.c.bf16 %v913_v30, %v912_v29 }
  0x26   : > { %1315 = vmatprep.subr.bf16.mxu1 %v1314_v32  ;;  %1333 = vmatprep.subr.bf16.mxu0 %v1377_v4 }
  0x28   : > { %1317 = vmatpush3.bf16.msra.mxu1 %v1314_v32  ;;  %v914_v32 = vld [vmem:[%s1799_s4 + $0xa0] sm:$0xff] }
  0x29   : > { %545 = vrot.lane.b32.xlu1 %v339_v17, %s1376_s13  ;;  %543 = vrot.lane.b32.xlu0 %v338_v18, %s1376_s13  ;;  %v904_v17 = vld [vmem:[%s1799_s4 + $0x50] sm:$0xff]  ;;  %v905_v18 = vld [vmem:[%s1799_s4 + $0x58] sm:$0xff] }
  0x2a   : > { %v1334_v19 = vpack.c.bf16 %v905_v18, %v904_v17 }
  0x2c   : > { %1335 = vmatpush1.bf16.msra.mxu0 %v1334_v19 }
  0x2d   : > { %514 = vrot.lane.b32.xlu0 %v340_v27, %s1375_s12  ;;  %547 = vrot.lane.b32.xlu1 %v340_v27, %s1376_s13  ;;  %v911_v27 = vld [vmem:[%s1799_s4 + $0x88] sm:$0xff] }
  0x2e   : > { %1336 = vmatprep.subr.bf16.mxu0 %v1377_v4  ;;  %v1343_v28 = vpack.c.bf16 %v911_v27, %v910_v26 }
  0x30   : > { %1338 = vmatpush1.bf16.msra.mxu0 %v1337_v22 }
  0x31   : > { %1339 = vmatprep.subr.bf16.mxu0 %v1377_v4 }
  0x34   : > { %1341 = vmatpush1.bf16.msra.mxu0 %v1340_v25 }
  0x35   : > { %1342 = vmatprep.subr.bf16.mxu0 %v1377_v4 }
  0x38   : > { %1344 = vmatpush1.bf16.msra.mxu0 %v1343_v28 }
  0x39   : > { %1345 = vmatprep.subr.bf16.mxu0 %v1377_v4 }
  0x3c   : > { %1347 = vmatpush1.bf16.msra.mxu0 %v1346_v31 }
  0x3d   : > { %1348 = vmatprep.subr.bf16.mxu0 %v1377_v4 }
  0x83   : > { %v505_v33 = vpop.permute.xlu1 %504  ;;  %v501_v34 = vpop.permute.xlu0 %500 }
  0x84   : > { %527 = vst.msk [vmem:[#allocation2 + $0x10] sm:$0xff] %vm524_vm3, %v505_v33  ;;  %525 = vst.msk [vmem:[#allocation2] sm:$0xff] %vm524_vm3, %v501_v34  ;;  %v915_v33 = vld [vmem:[%s1799_s4 + $0xa8] sm:$0xff] }
  0x85   : > { %v1349_v34 = vpack.c.bf16 %v915_v33, %v914_v32 }
  0x87   : > { %v534_v35 = vpop.permute.xlu1 %533  ;;  %v503_v36 = vpop.permute.xlu0 %502  ;;  %1350 = vmatpush1.bf16.msra.mxu0 %v1349_v34 }
  0x88   : > { %558 = vst.msk [vmem:[#allocation2 - $0x1] sm:$0xfe] %vm557_vm4, %v534_v35  ;;  %v916_v35 = vld [vmem:[%s1799_s4 + $0xb0] sm:$0xff]  ;;  %1351 = vmatprep.subr.bf16.mxu0 %v1377_v4 }
  0x89   : > { %526 = vst.msk [vmem:[#allocation2 + $0x8] sm:$0xff] %vm524_vm3, %v503_v36  ;;  %v917_v36 = vld [vmem:[%s1799_s4 + $0xb8] sm:$0xff] }
  0x8b   : > { %v538_v37 = vpop.permute.xlu1 %537  ;;  %v536_v38 = vpop.permute.xlu0 %535 }
  0x8c   : > { %561 = vst.msk [vmem:[#allocation2 + $0xf] sm:$0xff] %vm559_vm5, %v538_v37  ;;  %560 = vst.msk [vmem:[#allocation2 + $0x7] sm:$0xff] %vm559_vm5, %v536_v38  ;;  %v1352_v37 = vpack.c.bf16 %v917_v36, %v916_v35  ;;  %v1182_v38 = vld [vmem:[%s1797_s2] ss:$0 sm:$0xff] }
  0x8e   : > { %1353 = vmatpush1.bf16.msra.mxu0 %v1352_v37 }
  0x8f   : > { %v509_v39 = vpop.permute.xlu1 %508  ;;  %v507_v40 = vpop.permute.xlu0 %506 }
  0x90   : > { %529 = vst.msk [vmem:[#allocation2 + $0x20] sm:$0xff] %vm524_vm3, %v509_v39  ;;  %528 = vst.msk [vmem:[#allocation2 + $0x18] sm:$0xff] %vm524_vm3, %v507_v40  ;;  %v1690_v40 = vld [vmem:[%s1798_s3] ss:$0 sm:$0xff] }
  0x93   : > { %v542_v41 = vpop.permute.xlu1 %541  ;;  %v540_v42 = vpop.permute.xlu0 %539  ;;  %v567_v43 = vld [vmem:[#allocation2] sm:$0xff]  ;;  %v568_v44 = vld [vmem:[#allocation2 + $0x8] sm:$0xff] }
  0x94   : > { %563 = vst.msk [vmem:[#allocation2 + $0x1f] sm:$0xff] %vm559_vm5, %v542_v41  ;;  %562 = vst.msk [vmem:[#allocation2 + $0x17] sm:$0xff] %vm559_vm5, %v540_v42  ;;  %1274 = vmatprep.mubr.msk.f32.mxu1 %vm482_vm0, %v567_v43 }
  0x95   : > { %1275 = vmatmul.mubr.msk.f32.vlgmr.msra.gmra.mrb[8].mxu1 %vm482_vm0, %v568_v44 }
  0x97   : > { %v513_v45 = vpop.permute.xlu1 %512  ;;  %v511_v46 = vpop.permute.xlu0 %510 }
  0x98   : > { %531 = vst.msk [vmem:[#allocation2 + $0x30] sm:$0xff] %vm524_vm3, %v513_v45  ;;  %530 = vst.msk [vmem:[#allocation2 + $0x28] sm:$0xff] %vm524_vm3, %v511_v46 }
  0x9b   : > { %v546_v47 = vpop.permute.xlu1 %545  ;;  %v544_v48 = vpop.permute.xlu0 %543  ;;  %v569_v49 = vld [vmem:[#allocation2 + $0x10] sm:$0xff]  ;;  %v570_v50 = vld [vmem:[#allocation2 + $0x18] sm:$0xff] }
  0x9c   : > { %565 = vst.msk [vmem:[#allocation2 + $0x2f] sm:$0xff] %vm559_vm5, %v546_v47  ;;  %564 = vst.msk [vmem:[#allocation2 + $0x27] sm:$0xff] %vm559_vm5, %v544_v48  ;;  %1277 = vmatprep.mubr.msk.f32.mxu1 %vm482_vm0, %v569_v49 }
  0x9d   : > { %1278 = vmatmul.mubr.msk.f32.gmra.mrb[10].mxu1 %vm482_vm0, %v570_v50 }
  0x9f   : > { %v515_v51 = vpop.permute.xlu0 %514  ;;  %v548_v52 = vpop.permute.xlu1 %547 }
  0xa0   : > { %532 = vst.msk [vmem:[#allocation2 + $0x38] sm:$0xff] %vm524_vm3, %v515_v51 }
  0xa1   : > { %566 = vst.msk [vmem:[#allocation2 + $0x37] sm:$0xff] %vm559_vm5, %v548_v52 }
  0xa3   : > { %v571_v53 = vld [vmem:[#allocation2 + $0x20] sm:$0xff]  ;;  %v572_v54 = vld [vmem:[#allocation2 + $0x28] sm:$0xff] }
  0xa4   : > { %1280 = vmatprep.mubr.msk.f32.mxu1 %vm482_vm0, %v571_v53 }
  0xa5   : > { %1281 = vmatmul.mubr.msk.f32.gmra.mrb[12].mxu1 %vm482_vm0, %v572_v54 }
  0xa8   : > { %v573_v55 = vld [vmem:[#allocation2 + $0x30] sm:$0xff]  ;;  %v574_v56 = vld [vmem:[#allocation2 + $0x38] sm:$0xff] }
  0xa9   : > { %1283 = vmatprep.mubr.msk.f32.mxu1 %vm482_vm0, %v573_v55 }
  0xaa   : > { %1284 = vmatmul.mubr.msk.f32.gmra.mrb[14].mxu1 %vm482_vm0, %v574_v56 }
  0xe6   : > { %v1580_v57 = vpop.f32.mrb[0].mxu1 }
  0xe7   : > { %v1582_v58 = vpop.f32.mrb[1].mxu1 }
  0xea   : > { %v1584_v59 = vpop.f32.mrb[2].mxu1 }
  0xeb   : > { %v1586_v60 = vpop.f32.mrb[3].mxu1 }
  0xee   : > { %v1604_v61 = vpop.f32.mrb[4].mxu1 }
  0xef   : > { %v1606_v62 = vpop.f32.mrb[5].mxu1 }
  0xf2   : > { %v1608_v63 = vpop.f32.mrb[6].mxu1 }
  0xf3   : > { %v1610_v0 = vpop.f32.mrb[7].mxu1 }
 0x168   : > { %v1276_v39 = vpop.f32.mrb[8].mxu1 }
 0x169   : > { %v724_v41 = vmul.f32 %v1276_v39, %v1182_v38  ;;  %v677_v42 = vpop.f32.mrb[9].mxu1 }
 0x16a   : > { %v723_v43 = vmul.f32 %v1182_v38, %v677_v42 }
 0x16b   : > { %v739_v44 = vadd.f32 %v1690_v40, %v724_v41 }
 0x16c   : > { %v738_v45 = vadd.f32 %v1690_v40, %v723_v43 }
 0x16d   : > { %v747_v46 = vmax.f32 %v739_v44, 0.0 }
 0x16e   : > { %v746_v47 = vmax.f32 %v738_v45, 0.0 }
 0x16f   : > { %v781_v48 = vrot.slane %v747_v46, 7  ;;  %v847_v49 = vrot.slane %v747_v46, 1  ;;  %814 = vrot.lane.b32.xlu1 %v747_v46, %s1376_s13 }
 0x170   : > { %v780_v50 = vrot.slane %v746_v47, 7  ;;  %v846_v51 = vrot.slane %v746_v47, 1  ;;  %812 = vrot.lane.b32.xlu0 %v746_v47, %s1376_s13  ;;  %v1279_v52 = vpop.f32.mrb[10].mxu1 }
 0x171   : > { %v726_v53 = vmul.f32 %v1279_v52, %v1182_v38  ;;  %v687_v54 = vpop.f32.mrb[11].mxu1 }
 0x172   : > { %v848_v55 = vsel %vm845_vm7, %v846_v51, %v847_v49  ;;  %v725_v56 = vmul.f32 %v1182_v38, %v687_v54  ;;  %v782_v1 = vsel %vm779_vm8, %v780_v50, %v781_v48  ;;  %804 = vst.msk [vmem:[#allocation3] sm:$0xfe] %vm803_vm9, %v780_v50 }
 0x173   : > { %869 = vst.msk [vmem:[#allocation3 + $0x8] sm:$0xff] %vm755_vm6, %v848_v55  ;;  %v741_v2 = vadd.f32 %v1690_v40, %v726_v53  ;;  %805 = vst.msk [vmem:[#allocation3 + $0x10] sm:$0xff] %vm755_vm6, %v782_v1 }
 0x174   : > { %v740_v3 = vadd.f32 %v1690_v40, %v725_v56 }
 0x175   : > { %v749_v4 = vmax.f32 %v741_v2, 0.0 }
 0x176   : > { %v748_v5 = vmax.f32 %v740_v3, 0.0 }
 0x177   : > { %v785_v6 = vrot.slane %v749_v4, 7  ;;  %v851_v7 = vrot.slane %v749_v4, 1  ;;  %818 = vrot.lane.b32.xlu1 %v749_v4, %s1376_s13 }
 0x178   : > { %v783_v8 = vrot.slane %v748_v5, 7  ;;  %v849_v9 = vrot.slane %v748_v5, 1  ;;  %816 = vrot.lane.b32.xlu0 %v748_v5, %s1376_s13  ;;  %v1282_v10 = vpop.f32.mrb[12].mxu1 }
 0x179   : > { %v728_v11 = vmul.f32 %v1282_v10, %v1182_v38  ;;  %v697_v12 = vpop.f32.mrb[13].mxu1 }
 0x17a   : > { %v850_v13 = vsel %vm845_vm7, %v847_v49, %v849_v9  ;;  %v852_v14 = vsel %vm845_vm7, %v849_v9, %v851_v7  ;;  %v727_v15 = vmul.f32 %v1182_v38, %v697_v12  ;;  %v879_v16 = vld [vmem:[#allocation3 + $0x8] sm:$0xff]  ;;  %v786_v17 = vsel %vm779_vm8, %v783_v8, %v785_v6 }
 0x17b   : > { %870 = vst.msk [vmem:[#allocation3 + $0x18] sm:$0xff] %vm755_vm6, %v850_v13  ;;  %871 = vst.msk [vmem:[#allocation3 + $0x28] sm:$0xff] %vm755_vm6, %v852_v14  ;;  %v743_v18 = vadd.f32 %v1690_v40, %v728_v11  ;;  %1184 = vmatprep.mubr.msk.f32.mxu0 %vm755_vm6, %v879_v16  ;;  %v784_v19 = vsel %vm779_vm8, %v781_v48, %v783_v8  ;;  %v1192_v14 = vld [vmem:[%s1800_s5] ss:$0 sm:$0xff] }
 0x17c   : > { %807 = vst.msk [vmem:[#allocation3 + $0x30] sm:$0xff] %vm755_vm6, %v786_v17  ;;  %v742_v20 = vadd.f32 %v1690_v40, %v727_v15  ;;  %806 = vst.msk [vmem:[#allocation3 + $0x20] sm:$0xff] %vm755_vm6, %v784_v19  ;;  %v1165_v15 = vld [vmem:[%s1803_s8] ss:$0 sm:$0xff] }
 0x17d   : > { %v751_v21 = vmax.f32 %v743_v18, 0.0  ;;  %v1285_v22 = vpop.f32.mrb[14].mxu1  ;;  %v1193_v17 = vld [vmem:[%s1801_s6] ss:$0 sm:$0xff] }
 0x17e   : > { %v750_v23 = vmax.f32 %v742_v20, 0.0  ;;  %v730_v24 = vmul.f32 %v1285_v22, %v1182_v38  ;;  %v707_v25 = vpop.f32.mrb[15].mxu1  ;;  %v444_v20 = vadd.f32 %v1165_v15, %v1582_v58 }
 0x17f   : > { %v789_v26 = vrot.slane %v751_v21, 7  ;;  %v855_v27 = vrot.slane %v751_v21, 1  ;;  %v729_v28 = vmul.f32 %v1182_v38, %v707_v25  ;;  %822 = vrot.lane.b32.xlu1 %v751_v21, %s1376_s13 }
 0x180   : > { %v787_v29 = vrot.slane %v750_v23, 7  ;;  %v853_v30 = vrot.slane %v750_v23, 1  ;;  %v745_v31 = vadd.f32 %v1690_v40, %v730_v24  ;;  %820 = vrot.lane.b32.xlu0 %v750_v23, %s1376_s13 }
 0x181   : > { %v744_v32 = vadd.f32 %v1690_v40, %v729_v28 }
 0x182   : > { %v854_v33 = vsel %vm845_vm7, %v851_v7, %v853_v30  ;;  %v856_v34 = vsel %vm845_vm7, %v853_v30, %v855_v27  ;;  %v753_v35 = vmax.f32 %v745_v31, 0.0  ;;  %v790_v36 = vsel %vm779_vm8, %v787_v29, %v789_v26  ;;  %v881_v52 = vld [vmem:[#allocation3 + $0x18] sm:$0xff]  ;;  %v883_v54 = vld [vmem:[#allocation3 + $0x28] sm:$0xff] }
 0x183   : > { %872 = vst.msk [vmem:[#allocation3 + $0x38] sm:$0xff] %vm755_vm6, %v854_v33  ;;  %873 = vst.msk [vmem:[#allocation3 + $0x48] sm:$0xff] %vm755_vm6, %v856_v34  ;;  %v752_v37 = vmax.f32 %v744_v32, 0.0  ;;  %v788_v38 = vsel %vm779_vm8, %v785_v6, %v787_v29  ;;  %v454_v32 = vadd.f32 %v1165_v15, %v1586_v60 }
 0x184   : > { %809 = vst.msk [vmem:[#allocation3 + $0x50] sm:$0xff] %vm755_vm6, %v790_v36  ;;  %v793_v39 = vrot.slane %v753_v35, 7  ;;  %v859_v41 = vrot.slane %v753_v35, 1  ;;  %826 = vrot.lane.b32.xlu1 %v753_v35, %s1376_s13  ;;  %808 = vst.msk [vmem:[#allocation3 + $0x40] sm:$0xff] %vm755_vm6, %v788_v38  ;;  %v459_v38 = vadd.f32 %v1584_v59, %v1165_v15 }
 0x185   : > { %v791_v40 = vrot.slane %v752_v37, 7  ;;  %v857_v42 = vrot.slane %v752_v37, 1  ;;  %824 = vrot.lane.b32.xlu0 %v752_v37, %s1376_s13 }
 0x186   : > { %877 = vst.msk [vmem:[#allocation3 + $0x78] sm:$0x7f] %vm876_vm10, %v859_v41 }
 0x187   : > { %v858_v43 = vsel %vm845_vm7, %v855_v27, %v857_v42  ;;  %v860_v44 = vsel %vm845_vm7, %v857_v42, %v859_v41  ;;  %v794_v45 = vsel %vm779_vm8, %v791_v40, %v793_v39  ;;  %v792_v46 = vsel %vm779_vm8, %v789_v26, %v791_v40 }
 0x188   : > { %874 = vst.msk [vmem:[#allocation3 + $0x58] sm:$0xff] %vm755_vm6, %v858_v43  ;;  %875 = vst.msk [vmem:[#allocation3 + $0x68] sm:$0xff] %vm755_vm6, %v860_v44  ;;  %v449_v26 = vadd.f32 %v1580_v57, %v1165_v15  ;;  %v464_v44 = vadd.f32 %v1165_v15, %v1606_v62 }
 0x189   : > { %811 = vst.msk [vmem:[#allocation3 + $0x70] sm:$0xff] %vm755_vm6, %v794_v45  ;;  %810 = vst.msk [vmem:[#allocation3 + $0x60] sm:$0xff] %vm755_vm6, %v792_v46 }
 0x18a   : > { %v885_v2 = vld [vmem:[#allocation3 + $0x38] sm:$0xff]  ;;  %v887_v6 = vld [vmem:[#allocation3 + $0x48] sm:$0xff] }
 0x18d   : > { %v893_v12 = vld [vmem:[#allocation3 + $0x78] sm:$0xff] }
 0x18f   : > { %v889_v8 = vld [vmem:[#allocation3 + $0x58] sm:$0xff]  ;;  %v891_v10 = vld [vmem:[#allocation3 + $0x68] sm:$0xff] }
 0x1e1   : > { %v815_v47 = vpop.permute.xlu1 %814 }
 0x1e2   : > { %838 = vst.msk [vmem:[#allocation3 + $0x10] sm:$0xff] %vm836_vm11, %v815_v47  ;;  %v813_v48 = vpop.permute.xlu0 %812 }
 0x1e3   : > { %837 = vst.msk [vmem:[#allocation3] sm:$0xff] %vm836_vm11, %v813_v48 }
 0x1e9   : > { %v819_v49 = vpop.permute.xlu1 %818  ;;  %v880_v53 = vld [vmem:[#allocation3 + $0x10] sm:$0xff] }
 0x1ea   : > { %840 = vst.msk [vmem:[#allocation3 + $0x30] sm:$0xff] %vm836_vm11, %v819_v49  ;;  %v817_v50 = vpop.permute.xlu0 %816  ;;  %v878_v51 = vld [vmem:[#allocation3] sm:$0xff] }
 0x1eb   : > { %839 = vst.msk [vmem:[#allocation3 + $0x20] sm:$0xff] %vm836_vm11, %v817_v50  ;;  %1007 = vmatmul.mubr.f32.vlgmr.msra.gmra.mrb[0].mxu0 %v878_v51  ;;  %v469_v50 = vadd.f32 %v1604_v61, %v1165_v15 }
 0x1ec   : > { %1185 = vmatprep.mubr.msk.f32.mxu0 %vm755_vm6, %v881_v52 }
 0x1ef   : > { %1012 = vmatmul.mubr.f32.gmra.mrb[2].mxu0 %v880_v53 }
 0x1f0   : > { %1186 = vmatprep.mubr.msk.f32.mxu0 %vm755_vm6, %v883_v54 }
 0x1f1   : > { %v823_v55 = vpop.permute.xlu1 %822  ;;  %v884_v3 = vld [vmem:[#allocation3 + $0x30] sm:$0xff] }
 0x1f2   : > { %842 = vst.msk [vmem:[#allocation3 + $0x50] sm:$0xff] %vm836_vm11, %v823_v55  ;;  %v821_v56 = vpop.permute.xlu0 %820  ;;  %v882_v1 = vld [vmem:[#allocation3 + $0x20] sm:$0xff] }
 0x1f3   : > { %841 = vst.msk [vmem:[#allocation3 + $0x40] sm:$0xff] %vm836_vm11, %v821_v56  ;;  %1017 = vmatmul.mubr.f32.gmra.mrb[4].mxu0 %v882_v1  ;;  %v474_v56 = vadd.f32 %v1165_v15, %v1610_v0 }
 0x1f4   : > { %1187 = vmatprep.mubr.msk.f32.mxu0 %vm755_vm6, %v885_v2 }
 0x1f6   : > { %v827_v4 = vpop.permute.xlu1 %826 }
 0x1f7   : > { %1022 = vmatmul.mubr.f32.gmra.mrb[6].mxu0 %v884_v3  ;;  %844 = vst.msk [vmem:[#allocation3 + $0x70] sm:$0xff] %vm836_vm11, %v827_v4  ;;  %v825_v5 = vpop.permute.xlu0 %824 }
 0x1f8   : > { %843 = vst.msk [vmem:[#allocation3 + $0x60] sm:$0xff] %vm836_vm11, %v825_v5  ;;  %1188 = vmatprep.mubr.msk.f32.mxu0 %vm755_vm6, %v887_v6  ;;  %v479_v6 = vadd.f32 %v1608_v63, %v1165_v15 }
 0x1f9   : > { %v888_v9 = vld [vmem:[#allocation3 + $0x50] sm:$0xff] }
 0x1fa   : > { %v886_v7 = vld [vmem:[#allocation3 + $0x40] sm:$0xff] }
 0x1fb   : > { %1027 = vmatmul.mubr.f32.gmra.mrb[8].mxu0 %v886_v7 }
 0x1fc   : > { %1189 = vmatprep.mubr.msk.f32.mxu0 %vm755_vm6, %v889_v8 }
 0x1fe   : > { %v892_v13 = vld [vmem:[#allocation3 + $0x70] sm:$0xff] }
 0x1ff   : > { %1032 = vmatmul.mubr.f32.gmra.mrb[10].mxu0 %v888_v9  ;;  %v890_v11 = vld [vmem:[#allocation3 + $0x60] sm:$0xff] }
 0x200   : > { %1190 = vmatprep.mubr.msk.f32.mxu0 %vm755_vm6, %v891_v10 }
 0x203   : > { %1037 = vmatmul.mubr.f32.gmra.mrb[12].mxu0 %v890_v11 }
 0x204   : > { %1191 = vmatprep.mubr.msk.f32.mxu0 %vm755_vm6, %v893_v12 }
 0x207   : > { %1042 = vmatmul.mubr.f32.gmra.mrb[14].mxu0 %v892_v13 }
 0x2be   : > { %v1008_v16 = vpop.f32.mrb[0].mxu0 }
 0x2bf   : > { %v1054_v18 = vmul.f32 %v1192_v14, %v1008_v16  ;;  %v1010_v19 = vpop.f32.mrb[1].mxu0 }
 0x2c1   : > { %v1069_v21 = vadd.f32 %v1193_v17, %v1054_v18 }
 0x2c2   : > { %v1013_v22 = vpop.f32.mrb[2].mxu0 }
 0x2c3   : > { %v1077_v23 = vadd.f32 %v1069_v21, %v444_v20  ;;  %v1055_v24 = vmul.f32 %v1192_v14, %v1013_v22  ;;  %v1015_v25 = vpop.f32.mrb[3].mxu0 }
 0x2c5   : > { %v1085_v27 = vmax.f32 %v1077_v23, 0.0  ;;  %v1070_v28 = vadd.f32 %v1193_v17, %v1055_v24 }
 0x2c6   : > { %v1018_v29 = vpop.f32.mrb[4].mxu0 }
 0x2c7   : > { %1093 = vst.msk [vmem:[%s1767_s21] sm:$0xff] %vm755_vm6, %v1085_v27  ;;  %v1078_v58 = vadd.f32 %v1070_v28, %v449_v26  ;;  %v1056_v30 = vmul.f32 %v1192_v14, %v1018_v29  ;;  %v1020_v31 = vpop.f32.mrb[5].mxu0 }
 0x2c9   : > { %v1086_v33 = vmax.f32 %v1078_v58, 0.0  ;;  %v1071_v34 = vadd.f32 %v1193_v17, %v1056_v30 }
 0x2ca   : > { %v1023_v35 = vpop.f32.mrb[6].mxu0 }
 0x2cb   : > { %1094 = vst.msk [vmem:[%s1767_s21 + $0x8] sm:$0xff] %vm755_vm6, %v1086_v33  ;;  %v1079_v36 = vadd.f32 %v1071_v34, %v454_v32  ;;  %v1057_v37 = vmul.f32 %v1192_v14, %v1023_v35  ;;  %v1025_v57 = vpop.f32.mrb[7].mxu0 }
 0x2cd   : > { %v1087_v39 = vmax.f32 %v1079_v36, 0.0  ;;  %v1072_v41 = vadd.f32 %v1193_v17, %v1057_v37 }
 0x2ce   : > { %v1028_v40 = vpop.f32.mrb[8].mxu0 }
 0x2cf   : > { %1095 = vst.msk [vmem:[%s1767_s21 + $0x10] sm:$0xff] %vm755_vm6, %v1087_v39  ;;  %v1080_v42 = vadd.f32 %v1072_v41, %v459_v38  ;;  %v1058_v43 = vmul.f32 %v1192_v14, %v1028_v40  ;;  %v1030_v60 = vpop.f32.mrb[9].mxu0 }
 0x2d1   : > { %v1088_v45 = vmax.f32 %v1080_v42, 0.0  ;;  %v1073_v46 = vadd.f32 %v1193_v17, %v1058_v43 }
 0x2d2   : > { %v1033_v47 = vpop.f32.mrb[10].mxu0 }
 0x2d3   : > { %1096 = vst.msk [vmem:[%s1767_s21 + $0x18] sm:$0xff] %vm755_vm6, %v1088_v45  ;;  %v1081_v48 = vadd.f32 %v1073_v46, %v464_v44  ;;  %v1059_v49 = vmul.f32 %v1192_v14, %v1033_v47  ;;  %v1035_v59 = vpop.f32.mrb[11].mxu0 }
 0x2d5   : > { %v1089_v51 = vmax.f32 %v1081_v48, 0.0  ;;  %v1074_v52 = vadd.f32 %v1193_v17, %v1059_v49 }
 0x2d6   : > { %v1038_v53 = vpop.f32.mrb[12].mxu0 }
 0x2d7   : > { %1097 = vst.msk [vmem:[%s1767_s21 + $0x20] sm:$0xff] %vm755_vm6, %v1089_v51  ;;  %v1082_v54 = vadd.f32 %v1074_v52, %v469_v50  ;;  %v1060_v55 = vmul.f32 %v1192_v14, %v1038_v53  ;;  %v1040_v62 = vpop.f32.mrb[13].mxu0 }
 0x2d9   : > { %v1090_v1 = vmax.f32 %v1082_v54, 0.0  ;;  %v1075_v2 = vadd.f32 %v1193_v17, %v1060_v55 }
 0x2da   : > { %v1043_v3 = vpop.f32.mrb[14].mxu0 }
 0x2db   : > { %1098 = vst.msk [vmem:[%s1767_s21 + $0x28] sm:$0xff] %vm755_vm6, %v1090_v1  ;;  %v1083_v4 = vadd.f32 %v1075_v2, %v474_v56  ;;  %v1061_v5 = vmul.f32 %v1192_v14, %v1043_v3  ;;  %v1045_v61 = vpop.f32.mrb[15].mxu0 }
 0x2dd   : > { %v1091_v7 = vmax.f32 %v1083_v4, 0.0  ;;  %v1076_v8 = vadd.f32 %v1193_v17, %v1061_v5 }
 0x2df   : > { %1099 = vst.msk [vmem:[%s1767_s21 + $0x30] sm:$0xff] %vm755_vm6, %v1091_v7  ;;  %v1084_v9 = vadd.f32 %v1076_v8, %v479_v6 }
 0x2e1   : > { %v1092_v10 = vmax.f32 %v1084_v9, 0.0 }
 0x2e3   : > { %1100 = vst.msk [vmem:[%s1767_s21 + $0x38] sm:$0xff] %vm755_vm6, %v1092_v10 }
 0x2e4 PF: > { %s19_s30 = sadd.s32 1, %s1372_s30  }
 0x2e5   : > { %p16_p4 = scmp.ge.s32.totalorder %s19_s30, 4  }
 0x2e7   :  { %18 = sbr.rel (!%p16_p4) target bundleno = 1 (0x1), region = 86 }

</bundles_post_ra>
